<compile_context>
chip_gen: v7x
topology: tpu7x:2x2x1
jax: 0.10.0
libtpu: 0.0.40
codegen_flags: <defaults>
</compile_context>

<pallas_src>
import functools
import math

import jax
import jax.numpy as jnp
from jax.experimental import pallas as pl
from jax.experimental.pallas import tpu as pltpu


# ----------------------------------------------------------------------------
# Fused kernel: pos-encoding add + n_layers encoder layers + output head
# ----------------------------------------------------------------------------

def _layernorm(x, w, b, eps=1e-5):
    mu = jnp.mean(x, axis=-1, keepdims=True)
    xc = x - mu
    var = jnp.mean(xc * xc, axis=-1, keepdims=True)
    return xc * jax.lax.rsqrt(var + eps) * w + b


def fused_transformer_kernel(x_ref, pe_ref, wcat_ref, w2_ref, vecs_ref, o_ref,
                             *, n_heads):
    B, S, D = x_ref.shape
    n_layers, Hd, _ = w2_ref.shape
    H = n_heads
    dh = D // H
    N = B * S
    G = H * B                                    # one attention problem per (head, batch)
    scale = 1.0 / math.sqrt(dh)
    bf16 = jnp.bfloat16
    f32 = jnp.float32

    # Positional encoding (torch quirk: PE row b broadcast over every position
    # of batch b), then fold the batch into the row axis for QKV/FFN matmuls.
    x = (x_ref[...] + pe_ref[...]).reshape(N, D)            # (N, D) f32

    for l in range(n_layers):                    # tiny & static -> unrolled
        vrow = vecs_ref[l]                                   # (8, 128) f32
        b_qkv = vrow[0:1, :3 * D]                            # (1, 3D)
        b_o, ln1_w, ln1_b = vrow[1:2, :D], vrow[2:3, :D], vrow[3:4, :D]
        b_1 = vrow[4:5, :Hd]
        b_2, ln2_w, ln2_b = vrow[5:6, :D], vrow[6:7, :D], vrow[7:8, :D]

        w_qkv = wcat_ref[l, 0, :, :3 * D]                    # (D, 3D)  bf16
        w_o = wcat_ref[l, 1, :, :D]                          # (D, D)   bf16
        w_1 = wcat_ref[l, 2, :, :Hd]                         # (D, Hd)  bf16
        w_2 = w2_ref[l]                                      # (Hd, D)  bf16

        # ---- fused QKV projection: one wide (N,D)x(D,3D) MXU stream --------
        qkv = jnp.dot(x.astype(bf16), w_qkv,
                      preferred_element_type=f32) + b_qkv    # (N, 3D) f32

        # ---- split heads / un-fold batch -> (G = H*B, S, dh) ----------------
        def to_heads(base):
            cols = [qkv[:, base + h * dh: base + (h + 1) * dh] for h in range(H)]
            return jnp.stack(cols, axis=0).reshape(G, S, dh)  # g = h*B + b

        qh = (to_heads(0) * scale).astype(bf16)
        kh = to_heads(D).astype(bf16)
        vh = to_heads(2 * D).astype(bf16)

        # ---- per-(batch, head) attention: (G, S, S) scores ------------------
        # No cross-batch masking needed: each g is its own attention problem.
        s = jnp.einsum('gsd,gtd->gst', qh, kh, preferred_element_type=f32)
        s = s - jnp.max(s, axis=-1, keepdims=True)
        p = jnp.exp(s)
        p = p * pl.reciprocal(jnp.sum(p, axis=-1, keepdims=True), approx=True)
        o = jnp.einsum('gst,gtd->gsd', p.astype(bf16), vh,
                       preferred_element_type=f32)            # (G, S, dh)

        # ---- merge heads into lanes, single (N,D)x(D,D) out-projection -----
        o = o.reshape(H, N, dh)
        o2d = jnp.concatenate([o[h] for h in range(H)], axis=-1)   # (N, D)
        attn = jnp.dot(o2d.astype(bf16), w_o,
                       preferred_element_type=f32) + b_o

        x1 = _layernorm(x + attn, ln1_w, ln1_b)

        # ---- feed-forward (rows = B*S folded) -------------------------------
        ff = jnp.dot(x1.astype(bf16), w_1, preferred_element_type=f32) + b_1
        ff = jnp.maximum(ff, 0.0)
        ff = jnp.dot(ff.astype(bf16), w_2, preferred_element_type=f32) + b_2

        x = _layernorm(x1 + ff, ln2_w, ln2_b)

    # ---- output Linear(D, 1): fused lane reduction (no extra HBM round trip)
    vout = vecs_ref[n_layers]
    y = jnp.sum(x * vout[0:1, :D], axis=-1, keepdims=True) + vout[1:2, 0:1]
    o_ref[...] = y.astype(o_ref.dtype)


# ----------------------------------------------------------------------------
# Wrapper
# ----------------------------------------------------------------------------

def _vmem_limit_bytes(operands, out_bytes):
    in_bytes = sum(int(a.size) * a.dtype.itemsize for a in operands)
    footprint = in_bytes + out_bytes
    # Double-buffered operands + headroom for in-kernel intermediates; stay
    # well under v7x's 64 MiB physical VMEM.
    return int(min(56 * 2 ** 20, max(8 * 2 ** 20, 8 * footprint)))


def transformer_forward(src, packed, n_heads):
    B, S, D = src.shape
    pe = packed["pe"][:B][:, None, :]            # (B, 1, D): torch buffer quirk
    operands = (src.astype(jnp.float32), pe,
                packed["wcat"], packed["w2"], packed["vecs"])
    out2 = pl.pallas_call(
        functools.partial(fused_transformer_kernel, n_heads=n_heads),
        out_shape=jax.ShapeDtypeStruct((B * S, 1), jnp.float32),
        compiler_params=pltpu.CompilerParams(
            vmem_limit_bytes=_vmem_limit_bytes(operands, 4 * B * S)),
    )(*operands)
    return out2.reshape(B, S, 1)


# ----------------------------------------------------------------------------
# Parameter setup (deterministic, synthetic, torch-layout) + packing
# ----------------------------------------------------------------------------

def make_pos_encoding(max_len, d_model):
    position = jnp.arange(max_len, dtype=jnp.float32)[:, None]
    div_term = jnp.exp(jnp.arange(0, d_model, 2, dtype=jnp.float32)
                       * (-math.log(10000.0) / d_model))
    angles = position * div_term
    pe = jnp.zeros((max_len, d_model), jnp.float32)
    pe = pe.at[:, 0::2].set(jnp.sin(angles))
    pe = pe.at[:, 1::2].set(jnp.cos(angles))
    return pe


def init_params(key, n_features, n_heads, n_hidden, n_layers, max_len=5000):
    D, Hd = n_features, n_hidden
    layers = []
    for _ in range(n_layers):
        key, *ks = jax.random.split(key, 5)
        layers.append(dict(
            in_w=0.1 * jax.random.normal(ks[0], (3 * D, D), jnp.float32),   # torch (out,in)
            in_b=0.01 * jnp.ones((3 * D,), jnp.float32),
            out_w=0.1 * jax.random.normal(ks[1], (D, D), jnp.float32),
            out_b=0.01 * jnp.ones((D,), jnp.float32),
            ln1_w=jnp.ones((D,), jnp.float32), ln1_b=jnp.zeros((D,), jnp.float32),
            ln2_w=jnp.ones((D,), jnp.float32), ln2_b=jnp.zeros((D,), jnp.float32),
            w1=0.1 * jax.random.normal(ks[2], (Hd, D), jnp.float32),
            b1=0.01 * jnp.ones((Hd,), jnp.float32),
            w2=0.1 * jax.random.normal(ks[3], (D, Hd), jnp.float32),
            b2=0.01 * jnp.ones((D,), jnp.float32),
        ))
    key, ko = jax.random.split(key)
    w_out = 0.1 * jax.random.normal(ko, (1, D), jnp.float32)                # Linear(D, 1)
    b_out = jnp.zeros((1,), jnp.float32)
    return dict(pe=make_pos_encoding(max_len, D), layers=layers,
                w_out=w_out, b_out=b_out)


def pack_params(params, n_heads, mxu_dtype=jnp.bfloat16):
    """Repack torch-layout weights into a few stacked, 128-lane-slotted operands."""
    del n_heads  # head layout is handled in-kernel via static lane slices
    layers = params["layers"]
    L = len(layers)
    D = layers[0]["out_w"].shape[0]
    Hd = layers[0]["w1"].shape[0]
    assert 3 * D <= 128 and Hd <= 128, "lane-slot packing assumes <=128 lanes/field"

    wcat = jnp.zeros((L, 3, D, 128), jnp.float32)   # [qkv | out_proj | ffn1] slots
    w2 = jnp.zeros((L, Hd, D), jnp.float32)
    vecs = jnp.zeros((L + 1, 8, 128), jnp.float32)  # biases / LN / output head
    for l, lp in enumerate(layers):
        wcat = wcat.at[l, 0, :, :3 * D].set(lp["in_w"].T)      # (D, 3D)
        wcat = wcat.at[l, 1, :, :D].set(lp["out_w"].T)         # (D, D)
        wcat = wcat.at[l, 2, :, :Hd].set(lp["w1"].T)           # (D, Hd)
        w2 = w2.at[l].set(lp["w2"].T)                          # (Hd, D)
        vecs = vecs.at[l, 0, :3 * D].set(lp["in_b"])
        vecs = vecs.at[l, 1, :D].set(lp["out_b"])
        vecs = vecs.at[l, 2, :D].set(lp["ln1_w"])
        vecs = vecs.at[l, 3, :D].set(lp["ln1_b"])
        vecs = vecs.at[l, 4, :Hd].set(lp["b1"])
        vecs = vecs.at[l, 5, :D].set(lp["b2"])
        vecs = vecs.at[l, 6, :D].set(lp["ln2_w"])
        vecs = vecs.at[l, 7, :D].set(lp["ln2_b"])
    vecs = vecs.at[L, 0, :D].set(params["w_out"][0])
    vecs = vecs.at[L, 1, 0].set(params["b_out"][0])
    return dict(pe=params["pe"],
                wcat=wcat.astype(mxu_dtype),      # (L, 3, D, 128) bf16
                w2=w2.astype(mxu_dtype),          # (L, Hd, D)     bf16
                vecs=vecs)                        # (L+1, 8, 128)  f32


# ----------------------------------------------------------------------------
# Pure-JAX reference (float32) for correctness check
# ----------------------------------------------------------------------------

def _ln_ref(x, w, b, eps=1e-5):
    mu = x.mean(-1, keepdims=True)
    var = ((x - mu) ** 2).mean(-1, keepdims=True)
    return (x - mu) / jnp.sqrt(var + eps) * w + b


def reference_forward(src, params, n_heads):
    B, S, D = src.shape
    H, dh = n_heads, D // n_heads
    x = src + params["pe"][:B][:, None, :]
    for lp in params["layers"]:
        qkv = x @ lp["in_w"].T + lp["in_b"]
        q, k, v = qkv[..., :D], qkv[..., D:2 * D], qkv[..., 2 * D:]
        qh = q.reshape(B, S, H, dh).transpose(0, 2, 1, 3) / math.sqrt(dh)
        kh = k.reshape(B, S, H, dh).transpose(0, 2, 1, 3)
        vh = v.reshape(B, S, H, dh).transpose(0, 2, 1, 3)
        p = jax.nn.softmax(jnp.einsum("bhqd,bhkd->bhqk", qh, kh), axis=-1)
        o = jnp.einsum("bhqk,bhkd->bhqd", p, vh).transpose(0, 2, 1, 3).reshape(B, S, D)
        o = o @ lp["out_w"].T + lp["out_b"]
        x1 = _ln_ref(x + o, lp["ln1_w"], lp["ln1_b"])
        ff = jnp.maximum(x1 @ lp["w1"].T + lp["b1"], 0.0) @ lp["w2"].T + lp["b2"]
        x = _ln_ref(x1 + ff, lp["ln2_w"], lp["ln2_b"])
    return x @ params["w_out"].T + params["b_out"]


# ----------------------------------------------------------------------------
if __name__ == "__main__":
    n_features, n_heads, n_hidden, n_layers = 32, 4, 64, 2
    B, S = 2, 8

    key = jax.random.PRNGKey(0)
    kx, kp = jax.random.split(key)
    src = jax.random.normal(kx, (B, S, n_features), jnp.float32)
    params = init_params(kp, n_features, n_heads, n_hidden, n_layers)
    packed = pack_params(params, n_heads)

    out = jax.block_until_ready(transformer_forward(src, packed, n_heads))
    assert out.shape == (B, S, 1), out.shape

    ref = jax.block_until_ready(reference_forward(src, params, n_heads))
    max_err = float(jnp.max(jnp.abs(out - ref)))
    # bf16 MXU operands + approx softmax reciprocal vs float32 reference.
    assert jnp.allclose(out, ref, rtol=2e-2, atol=2e-2), max_err

    print("KERNEL_OK")
</pallas_src>

<mosaic_0001>
module attributes {stable_mosaic.version = 11 : i64} {
  func.func @fused_transformer_kernel(%arg0: memref<2x8x32xf32, #tpu.memory_space<vmem>>, %arg1: memref<2x1x32xf32, #tpu.memory_space<vmem>>, %arg2: memref<2x3x32x128xbf16, #tpu.memory_space<vmem>>, %arg3: memref<2x64x32xbf16, #tpu.memory_space<vmem>>, %arg4: memref<3x8x128xf32, #tpu.memory_space<vmem>>, %arg5: memref<16x1xf32, #tpu.memory_space<vmem>>) attributes {dimension_semantics = [], scalar_prefetch = 0 : i64, scratch_operands = 0 : i64, tpu.core_type = #tpu.core_type<tc>} {
    %c0 = arith.constant 0 : index
    %c0_0 = arith.constant 0 : index
    %c0_1 = arith.constant 0 : index
    %0 = vector.load %arg0[%c0, %c0_0, %c0_1] : memref<2x8x32xf32, #tpu.memory_space<vmem>>, vector<2x8x32xf32>
    %c0_2 = arith.constant 0 : index
    %c0_3 = arith.constant 0 : index
    %c0_4 = arith.constant 0 : index
    %1 = vector.load %arg1[%c0_2, %c0_3, %c0_4] : memref<2x1x32xf32, #tpu.memory_space<vmem>>, vector<2x1x32xf32>
    %2 = vector.broadcast %1 : vector<2x1x32xf32> to vector<2x8x32xf32>
    %3 = arith.addf %0, %2 : vector<2x8x32xf32>
    %4 = vector.shape_cast %3 : vector<2x8x32xf32> to vector<16x32xf32>
    %c0_5 = arith.constant 0 : index
    %c0_6 = arith.constant 0 : index
    %c0_7 = arith.constant 0 : index
    %5 = vector.load %arg4[%c0_5, %c0_6, %c0_7] : memref<3x8x128xf32, #tpu.memory_space<vmem>>, vector<1x8x128xf32>
    %6 = vector.shape_cast %5 : vector<1x8x128xf32> to vector<8x128xf32>
    %7 = vector.extract_strided_slice %6 {offsets = [0, 0], sizes = [1, 96], strides = [1, 1]} : vector<8x128xf32> to vector<1x96xf32>
    %8 = vector.extract_strided_slice %6 {offsets = [1, 0], sizes = [1, 32], strides = [1, 1]} : vector<8x128xf32> to vector<1x32xf32>
    %9 = vector.extract_strided_slice %6 {offsets = [2, 0], sizes = [1, 32], strides = [1, 1]} : vector<8x128xf32> to vector<1x32xf32>
    %10 = vector.extract_strided_slice %6 {offsets = [3, 0], sizes = [1, 32], strides = [1, 1]} : vector<8x128xf32> to vector<1x32xf32>
    %11 = vector.extract_strided_slice %6 {offsets = [4, 0], sizes = [1, 64], strides = [1, 1]} : vector<8x128xf32> to vector<1x64xf32>
    %12 = vector.extract_strided_slice %6 {offsets = [5, 0], sizes = [1, 32], strides = [1, 1]} : vector<8x128xf32> to vector<1x32xf32>
    %13 = vector.extract_strided_slice %6 {offsets = [6, 0], sizes = [1, 32], strides = [1, 1]} : vector<8x128xf32> to vector<1x32xf32>
    %14 = vector.extract_strided_slice %6 {offsets = [7, 0], sizes = [1, 32], strides = [1, 1]} : vector<8x128xf32> to vector<1x32xf32>
    %c0_8 = arith.constant 0 : index
    %c0_9 = arith.constant 0 : index
    %c0_10 = arith.constant 0 : index
    %c0_11 = arith.constant 0 : index
    %15 = vector.load %arg2[%c0_8, %c0_9, %c0_10, %c0_11] : memref<2x3x32x128xbf16, #tpu.memory_space<vmem>>, vector<1x1x32x96xbf16>
    %16 = vector.shape_cast %15 : vector<1x1x32x96xbf16> to vector<32x96xbf16>
    %c0_12 = arith.constant 0 : index
    %c1 = arith.constant 1 : index
    %c0_13 = arith.constant 0 : index
    %c0_14 = arith.constant 0 : index
    %17 = vector.load %arg2[%c0_12, %c1, %c0_13, %c0_14] : memref<2x3x32x128xbf16, #tpu.memory_space<vmem>>, vector<1x1x32x32xbf16>
    %18 = vector.shape_cast %17 : vector<1x1x32x32xbf16> to vector<32x32xbf16>
    %c0_15 = arith.constant 0 : index
    %c2 = arith.constant 2 : index
    %c0_16 = arith.constant 0 : index
    %c0_17 = arith.constant 0 : index
    %19 = vector.load %arg2[%c0_15, %c2, %c0_16, %c0_17] : memref<2x3x32x128xbf16, #tpu.memory_space<vmem>>, vector<1x1x32x64xbf16>
    %20 = vector.shape_cast %19 : vector<1x1x32x64xbf16> to vector<32x64xbf16>
    %c0_18 = arith.constant 0 : index
    %c0_19 = arith.constant 0 : index
    %c0_20 = arith.constant 0 : index
    %21 = vector.load %arg3[%c0_18, %c0_19, %c0_20] : memref<2x64x32xbf16, #tpu.memory_space<vmem>>, vector<1x64x32xbf16>
    %22 = vector.shape_cast %21 : vector<1x64x32xbf16> to vector<64x32xbf16>
    %23 = arith.truncf %4 : vector<16x32xf32> to vector<16x32xbf16>
    %cst = arith.constant dense<0.000000e+00> : vector<16x96xf32>
    %24 = tpu.matmul %23, %16, %cst {dimension_numbers = #tpu.dot_dimension_numbers<[1], [0], [0], [1], [0, 0, 1, 1], [], []>} : vector<16x32xbf16>, vector<32x96xbf16>, vector<16x96xf32> -> vector<16x96xf32>
    %25 = vector.broadcast %7 : vector<1x96xf32> to vector<16x96xf32>
    %26 = arith.addf %24, %25 : vector<16x96xf32>
    %27 = vector.extract_strided_slice %26 {offsets = [0, 0], sizes = [16, 8], strides = [1, 1]} : vector<16x96xf32> to vector<16x8xf32>
    %28 = vector.extract_strided_slice %26 {offsets = [0, 8], sizes = [16, 8], strides = [1, 1]} : vector<16x96xf32> to vector<16x8xf32>
    %29 = vector.extract_strided_slice %26 {offsets = [0, 16], sizes = [16, 8], strides = [1, 1]} : vector<16x96xf32> to vector<16x8xf32>
    %30 = vector.extract_strided_slice %26 {offsets = [0, 24], sizes = [16, 8], strides = [1, 1]} : vector<16x96xf32> to vector<16x8xf32>
    %31 = vector.shape_cast %27 : vector<16x8xf32> to vector<1x16x8xf32>
    %32 = vector.shape_cast %28 : vector<16x8xf32> to vector<1x16x8xf32>
    %33 = vector.shape_cast %29 : vector<16x8xf32> to vector<1x16x8xf32>
    %34 = vector.shape_cast %30 : vector<16x8xf32> to vector<1x16x8xf32>
    %35 = tpu.concatenate %31, %32, %33, %34 in 0 : vector<1x16x8xf32>, vector<1x16x8xf32>, vector<1x16x8xf32>, vector<1x16x8xf32> -> vector<4x16x8xf32>
    %36 = vector.shape_cast %35 : vector<4x16x8xf32> to vector<8x8x8xf32>
    %cst_21 = arith.constant 0.353553385 : f32
    %37 = vector.broadcast %cst_21 : f32 to vector<8x8x8xf32>
    %38 = arith.mulf %36, %37 : vector<8x8x8xf32>
    %39 = arith.truncf %38 : vector<8x8x8xf32> to vector<8x8x8xbf16>
    %40 = vector.extract_strided_slice %26 {offsets = [0, 32], sizes = [16, 8], strides = [1, 1]} : vector<16x96xf32> to vector<16x8xf32>
    %41 = vector.extract_strided_slice %26 {offsets = [0, 40], sizes = [16, 8], strides = [1, 1]} : vector<16x96xf32> to vector<16x8xf32>
    %42 = vector.extract_strided_slice %26 {offsets = [0, 48], sizes = [16, 8], strides = [1, 1]} : vector<16x96xf32> to vector<16x8xf32>
    %43 = vector.extract_strided_slice %26 {offsets = [0, 56], sizes = [16, 8], strides = [1, 1]} : vector<16x96xf32> to vector<16x8xf32>
    %44 = vector.shape_cast %40 : vector<16x8xf32> to vector<1x16x8xf32>
    %45 = vector.shape_cast %41 : vector<16x8xf32> to vector<1x16x8xf32>
    %46 = vector.shape_cast %42 : vector<16x8xf32> to vector<1x16x8xf32>
    %47 = vector.shape_cast %43 : vector<16x8xf32> to vector<1x16x8xf32>
    %48 = tpu.concatenate %44, %45, %46, %47 in 0 : vector<1x16x8xf32>, vector<1x16x8xf32>, vector<1x16x8xf32>, vector<1x16x8xf32> -> vector<4x16x8xf32>
    %49 = vector.shape_cast %48 : vector<4x16x8xf32> to vector<8x8x8xf32>
    %50 = arith.truncf %49 : vector<8x8x8xf32> to vector<8x8x8xbf16>
    %51 = vector.extract_strided_slice %26 {offsets = [0, 64], sizes = [16, 8], strides = [1, 1]} : vector<16x96xf32> to vector<16x8xf32>
    %52 = vector.extract_strided_slice %26 {offsets = [0, 72], sizes = [16, 8], strides = [1, 1]} : vector<16x96xf32> to vector<16x8xf32>
    %53 = vector.extract_strided_slice %26 {offsets = [0, 80], sizes = [16, 8], strides = [1, 1]} : vector<16x96xf32> to vector<16x8xf32>
    %54 = vector.extract_strided_slice %26 {offsets = [0, 88], sizes = [16, 8], strides = [1, 1]} : vector<16x96xf32> to vector<16x8xf32>
    %55 = vector.shape_cast %51 : vector<16x8xf32> to vector<1x16x8xf32>
    %56 = vector.shape_cast %52 : vector<16x8xf32> to vector<1x16x8xf32>
    %57 = vector.shape_cast %53 : vector<16x8xf32> to vector<1x16x8xf32>
    %58 = vector.shape_cast %54 : vector<16x8xf32> to vector<1x16x8xf32>
    %59 = tpu.concatenate %55, %56, %57, %58 in 0 : vector<1x16x8xf32>, vector<1x16x8xf32>, vector<1x16x8xf32>, vector<1x16x8xf32> -> vector<4x16x8xf32>
    %60 = vector.shape_cast %59 : vector<4x16x8xf32> to vector<8x8x8xf32>
    %61 = arith.truncf %60 : vector<8x8x8xf32> to vector<8x8x8xbf16>
    "tpu.trace_start"() <{level = 10 : i32, message = "gsd,gtd->gst"}> : () -> ()
    %cst_22 = arith.constant dense<0.000000e+00> : vector<8x8x8xf32>
    %62 = tpu.matmul %39, %50, %cst_22 {dimension_numbers = #tpu.dot_dimension_numbers<[2], [2], [1], [1], [0, 0, 0, 1, 1, 1], [0], [0]>} : vector<8x8x8xbf16>, vector<8x8x8xbf16>, vector<8x8x8xf32> -> vector<8x8x8xf32>
    "tpu.trace_stop"() : () -> ()
    %cst_23 = arith.constant dense<0xFF800000> : vector<8x8xf32>
    %63 = vector.multi_reduction <maximumf>, %62, %cst_23 [2] : vector<8x8x8xf32> to vector<8x8xf32>
    %64 = vector.shape_cast %63 : vector<8x8xf32> to vector<8x8x1xf32>
    %65 = vector.broadcast %64 : vector<8x8x1xf32> to vector<8x8x8xf32>
    %66 = arith.subf %62, %65 : vector<8x8x8xf32>
    %67 = math.exp %66 : vector<8x8x8xf32>
    %cst_24 = arith.constant dense<0.000000e+00> : vector<8x8xf32>
    %68 = vector.multi_reduction <add>, %67, %cst_24 [2] : vector<8x8x8xf32> to vector<8x8xf32>
    %69 = vector.shape_cast %68 : vector<8x8xf32> to vector<8x8x1xf32>
    %70 = tpu.reciprocal %69 {approx = true} : vector<8x8x1xf32> -> vector<8x8x1xf32>
    %71 = vector.broadcast %70 : vector<8x8x1xf32> to vector<8x8x8xf32>
    %72 = arith.mulf %67, %71 : vector<8x8x8xf32>
    %73 = arith.truncf %72 : vector<8x8x8xf32> to vector<8x8x8xbf16>
    "tpu.trace_start"() <{level = 10 : i32, message = "gst,gtd->gsd"}> : () -> ()
    %cst_25 = arith.constant dense<0.000000e+00> : vector<8x8x8xf32>
    %74 = tpu.matmul %73, %61, %cst_25 {dimension_numbers = #tpu.dot_dimension_numbers<[2], [1], [1], [2], [0, 0, 0, 1, 1, 2], [0], [0]>} : vector<8x8x8xbf16>, vector<8x8x8xbf16>, vector<8x8x8xf32> -> vector<8x8x8xf32>
    "tpu.trace_stop"() : () -> ()
    %75 = vector.shape_cast %74 : vector<8x8x8xf32> to vector<4x16x8xf32>
    %76 = vector.extract_strided_slice %75 {offsets = [0, 0, 0], sizes = [1, 16, 8], strides = [1, 1, 1]} : vector<4x16x8xf32> to vector<1x16x8xf32>
    %77 = vector.shape_cast %76 : vector<1x16x8xf32> to vector<16x8xf32>
    %78 = vector.extract_strided_slice %75 {offsets = [1, 0, 0], sizes = [1, 16, 8], strides = [1, 1, 1]} : vector<4x16x8xf32> to vector<1x16x8xf32>
    %79 = vector.shape_cast %78 : vector<1x16x8xf32> to vector<16x8xf32>
    %80 = vector.extract_strided_slice %75 {offsets = [2, 0, 0], sizes = [1, 16, 8], strides = [1, 1, 1]} : vector<4x16x8xf32> to vector<1x16x8xf32>
    %81 = vector.shape_cast %80 : vector<1x16x8xf32> to vector<16x8xf32>
    %82 = vector.extract_strided_slice %75 {offsets = [3, 0, 0], sizes = [1, 16, 8], strides = [1, 1, 1]} : vector<4x16x8xf32> to vector<1x16x8xf32>
    %83 = vector.shape_cast %82 : vector<1x16x8xf32> to vector<16x8xf32>
    %84 = tpu.concatenate %77, %79, %81, %83 in 1 : vector<16x8xf32>, vector<16x8xf32>, vector<16x8xf32>, vector<16x8xf32> -> vector<16x32xf32>
    %85 = arith.truncf %84 : vector<16x32xf32> to vector<16x32xbf16>
    %cst_26 = arith.constant dense<0.000000e+00> : vector<16x32xf32>
    %86 = tpu.matmul %85, %18, %cst_26 {dimension_numbers = #tpu.dot_dimension_numbers<[1], [0], [0], [1], [0, 0, 1, 1], [], []>} : vector<16x32xbf16>, vector<32x32xbf16>, vector<16x32xf32> -> vector<16x32xf32>
    %87 = vector.broadcast %8 : vector<1x32xf32> to vector<16x32xf32>
    %88 = arith.addf %86, %87 : vector<16x32xf32>
    %89 = arith.addf %4, %88 : vector<16x32xf32>
    %cst_27 = arith.constant dense<0.000000e+00> : vector<16xf32>
    %90 = vector.multi_reduction <add>, %89, %cst_27 [1] : vector<16x32xf32> to vector<16xf32>
    %91 = vector.shape_cast %90 : vector<16xf32> to vector<16x1xf32>
    %cst_28 = arith.constant 3.200000e+01 : f32
    %92 = vector.broadcast %cst_28 : f32 to vector<16x1xf32>
    %93 = arith.divf %91, %92 : vector<16x1xf32>
    %94 = vector.broadcast %93 : vector<16x1xf32> to vector<16x32xf32>
    %95 = arith.subf %89, %94 : vector<16x32xf32>
    %96 = arith.mulf %95, %95 : vector<16x32xf32>
    %cst_29 = arith.constant dense<0.000000e+00> : vector<16xf32>
    %97 = vector.multi_reduction <add>, %96, %cst_29 [1] : vector<16x32xf32> to vector<16xf32>
    %98 = vector.shape_cast %97 : vector<16xf32> to vector<16x1xf32>
    %cst_30 = arith.constant 3.200000e+01 : f32
    %99 = vector.broadcast %cst_30 : f32 to vector<16x1xf32>
    %100 = arith.divf %98, %99 : vector<16x1xf32>
    %cst_31 = arith.constant 9.99999974E-6 : f32
    %101 = vector.broadcast %cst_31 : f32 to vector<16x1xf32>
    %102 = arith.addf %100, %101 : vector<16x1xf32>
    %103 = math.rsqrt %102 : vector<16x1xf32>
    %104 = vector.broadcast %103 : vector<16x1xf32> to vector<16x32xf32>
    %105 = arith.mulf %95, %104 : vector<16x32xf32>
    %106 = vector.broadcast %9 : vector<1x32xf32> to vector<16x32xf32>
    %107 = arith.mulf %105, %106 : vector<16x32xf32>
    %108 = vector.broadcast %10 : vector<1x32xf32> to vector<16x32xf32>
    %109 = arith.addf %107, %108 : vector<16x32xf32>
    %110 = arith.truncf %109 : vector<16x32xf32> to vector<16x32xbf16>
    %cst_32 = arith.constant dense<0.000000e+00> : vector<16x64xf32>
    %111 = tpu.matmul %110, %20, %cst_32 {dimension_numbers = #tpu.dot_dimension_numbers<[1], [0], [0], [1], [0, 0, 1, 1], [], []>} : vector<16x32xbf16>, vector<32x64xbf16>, vector<16x64xf32> -> vector<16x64xf32>
    %112 = vector.broadcast %11 : vector<1x64xf32> to vector<16x64xf32>
    %113 = arith.addf %111, %112 : vector<16x64xf32>
    %cst_33 = arith.constant 0.000000e+00 : f32
    %114 = vector.broadcast %cst_33 : f32 to vector<16x64xf32>
    %115 = arith.maximumf %113, %114 : vector<16x64xf32>
    %116 = arith.truncf %115 : vector<16x64xf32> to vector<16x64xbf16>
    %cst_34 = arith.constant dense<0.000000e+00> : vector<16x32xf32>
    %117 = tpu.matmul %116, %22, %cst_34 {dimension_numbers = #tpu.dot_dimension_numbers<[1], [0], [0], [1], [0, 0, 1, 1], [], []>} : vector<16x64xbf16>, vector<64x32xbf16>, vector<16x32xf32> -> vector<16x32xf32>
    %118 = vector.broadcast %12 : vector<1x32xf32> to vector<16x32xf32>
    %119 = arith.addf %117, %118 : vector<16x32xf32>
    %120 = arith.addf %109, %119 : vector<16x32xf32>
    %cst_35 = arith.constant dense<0.000000e+00> : vector<16xf32>
    %121 = vector.multi_reduction <add>, %120, %cst_35 [1] : vector<16x32xf32> to vector<16xf32>
    %122 = vector.shape_cast %121 : vector<16xf32> to vector<16x1xf32>
    %cst_36 = arith.constant 3.200000e+01 : f32
    %123 = vector.broadcast %cst_36 : f32 to vector<16x1xf32>
    %124 = arith.divf %122, %123 : vector<16x1xf32>
    %125 = vector.broadcast %124 : vector<16x1xf32> to vector<16x32xf32>
    %126 = arith.subf %120, %125 : vector<16x32xf32>
    %127 = arith.mulf %126, %126 : vector<16x32xf32>
    %cst_37 = arith.constant dense<0.000000e+00> : vector<16xf32>
    %128 = vector.multi_reduction <add>, %127, %cst_37 [1] : vector<16x32xf32> to vector<16xf32>
    %129 = vector.shape_cast %128 : vector<16xf32> to vector<16x1xf32>
    %cst_38 = arith.constant 3.200000e+01 : f32
    %130 = vector.broadcast %cst_38 : f32 to vector<16x1xf32>
    %131 = arith.divf %129, %130 : vector<16x1xf32>
    %cst_39 = arith.constant 9.99999974E-6 : f32
    %132 = vector.broadcast %cst_39 : f32 to vector<16x1xf32>
    %133 = arith.addf %131, %132 : vector<16x1xf32>
    %134 = math.rsqrt %133 : vector<16x1xf32>
    %135 = vector.broadcast %134 : vector<16x1xf32> to vector<16x32xf32>
    %136 = arith.mulf %126, %135 : vector<16x32xf32>
    %137 = vector.broadcast %13 : vector<1x32xf32> to vector<16x32xf32>
    %138 = arith.mulf %136, %137 : vector<16x32xf32>
    %139 = vector.broadcast %14 : vector<1x32xf32> to vector<16x32xf32>
    %140 = arith.addf %138, %139 : vector<16x32xf32>
    %c1_40 = arith.constant 1 : index
    %c0_41 = arith.constant 0 : index
    %c0_42 = arith.constant 0 : index
    %141 = vector.load %arg4[%c1_40, %c0_41, %c0_42] : memref<3x8x128xf32, #tpu.memory_space<vmem>>, vector<1x8x128xf32>
    %142 = vector.shape_cast %141 : vector<1x8x128xf32> to vector<8x128xf32>
    %143 = vector.extract_strided_slice %142 {offsets = [0, 0], sizes = [1, 96], strides = [1, 1]} : vector<8x128xf32> to vector<1x96xf32>
    %144 = vector.extract_strided_slice %142 {offsets = [1, 0], sizes = [1, 32], strides = [1, 1]} : vector<8x128xf32> to vector<1x32xf32>
    %145 = vector.extract_strided_slice %142 {offsets = [2, 0], sizes = [1, 32], strides = [1, 1]} : vector<8x128xf32> to vector<1x32xf32>
    %146 = vector.extract_strided_slice %142 {offsets = [3, 0], sizes = [1, 32], strides = [1, 1]} : vector<8x128xf32> to vector<1x32xf32>
    %147 = vector.extract_strided_slice %142 {offsets = [4, 0], sizes = [1, 64], strides = [1, 1]} : vector<8x128xf32> to vector<1x64xf32>
    %148 = vector.extract_strided_slice %142 {offsets = [5, 0], sizes = [1, 32], strides = [1, 1]} : vector<8x128xf32> to vector<1x32xf32>
    %149 = vector.extract_strided_slice %142 {offsets = [6, 0], sizes = [1, 32], strides = [1, 1]} : vector<8x128xf32> to vector<1x32xf32>
    %150 = vector.extract_strided_slice %142 {offsets = [7, 0], sizes = [1, 32], strides = [1, 1]} : vector<8x128xf32> to vector<1x32xf32>
    %c1_43 = arith.constant 1 : index
    %c0_44 = arith.constant 0 : index
    %c0_45 = arith.constant 0 : index
    %c0_46 = arith.constant 0 : index
    %151 = vector.load %arg2[%c1_43, %c0_44, %c0_45, %c0_46] : memref<2x3x32x128xbf16, #tpu.memory_space<vmem>>, vector<1x1x32x96xbf16>
    %152 = vector.shape_cast %151 : vector<1x1x32x96xbf16> to vector<32x96xbf16>
    %c1_47 = arith.constant 1 : index
    %c1_48 = arith.constant 1 : index
    %c0_49 = arith.constant 0 : index
    %c0_50 = arith.constant 0 : index
    %153 = vector.load %arg2[%c1_47, %c1_48, %c0_49, %c0_50] : memref<2x3x32x128xbf16, #tpu.memory_space<vmem>>, vector<1x1x32x32xbf16>
    %154 = vector.shape_cast %153 : vector<1x1x32x32xbf16> to vector<32x32xbf16>
    %c1_51 = arith.constant 1 : index
    %c2_52 = arith.constant 2 : index
    %c0_53 = arith.constant 0 : index
    %c0_54 = arith.constant 0 : index
    %155 = vector.load %arg2[%c1_51, %c2_52, %c0_53, %c0_54] : memref<2x3x32x128xbf16, #tpu.memory_space<vmem>>, vector<1x1x32x64xbf16>
    %156 = vector.shape_cast %155 : vector<1x1x32x64xbf16> to vector<32x64xbf16>
    %c1_55 = arith.constant 1 : index
    %c0_56 = arith.constant 0 : index
    %c0_57 = arith.constant 0 : index
    %157 = vector.load %arg3[%c1_55, %c0_56, %c0_57] : memref<2x64x32xbf16, #tpu.memory_space<vmem>>, vector<1x64x32xbf16>
    %158 = vector.shape_cast %157 : vector<1x64x32xbf16> to vector<64x32xbf16>
    %159 = arith.truncf %140 : vector<16x32xf32> to vector<16x32xbf16>
    %cst_58 = arith.constant dense<0.000000e+00> : vector<16x96xf32>
    %160 = tpu.matmul %159, %152, %cst_58 {dimension_numbers = #tpu.dot_dimension_numbers<[1], [0], [0], [1], [0, 0, 1, 1], [], []>} : vector<16x32xbf16>, vector<32x96xbf16>, vector<16x96xf32> -> vector<16x96xf32>
    %161 = vector.broadcast %143 : vector<1x96xf32> to vector<16x96xf32>
    %162 = arith.addf %160, %161 : vector<16x96xf32>
    %163 = vector.extract_strided_slice %162 {offsets = [0, 0], sizes = [16, 8], strides = [1, 1]} : vector<16x96xf32> to vector<16x8xf32>
    %164 = vector.extract_strided_slice %162 {offsets = [0, 8], sizes = [16, 8], strides = [1, 1]} : vector<16x96xf32> to vector<16x8xf32>
    %165 = vector.extract_strided_slice %162 {offsets = [0, 16], sizes = [16, 8], strides = [1, 1]} : vector<16x96xf32> to vector<16x8xf32>
    %166 = vector.extract_strided_slice %162 {offsets = [0, 24], sizes = [16, 8], strides = [1, 1]} : vector<16x96xf32> to vector<16x8xf32>
    %167 = vector.shape_cast %163 : vector<16x8xf32> to vector<1x16x8xf32>
    %168 = vector.shape_cast %164 : vector<16x8xf32> to vector<1x16x8xf32>
    %169 = vector.shape_cast %165 : vector<16x8xf32> to vector<1x16x8xf32>
    %170 = vector.shape_cast %166 : vector<16x8xf32> to vector<1x16x8xf32>
    %171 = tpu.concatenate %167, %168, %169, %170 in 0 : vector<1x16x8xf32>, vector<1x16x8xf32>, vector<1x16x8xf32>, vector<1x16x8xf32> -> vector<4x16x8xf32>
    %172 = vector.shape_cast %171 : vector<4x16x8xf32> to vector<8x8x8xf32>
    %cst_59 = arith.constant 0.353553385 : f32
    %173 = vector.broadcast %cst_59 : f32 to vector<8x8x8xf32>
    %174 = arith.mulf %172, %173 : vector<8x8x8xf32>
    %175 = arith.truncf %174 : vector<8x8x8xf32> to vector<8x8x8xbf16>
    %176 = vector.extract_strided_slice %162 {offsets = [0, 32], sizes = [16, 8], strides = [1, 1]} : vector<16x96xf32> to vector<16x8xf32>
    %177 = vector.extract_strided_slice %162 {offsets = [0, 40], sizes = [16, 8], strides = [1, 1]} : vector<16x96xf32> to vector<16x8xf32>
    %178 = vector.extract_strided_slice %162 {offsets = [0, 48], sizes = [16, 8], strides = [1, 1]} : vector<16x96xf32> to vector<16x8xf32>
    %179 = vector.extract_strided_slice %162 {offsets = [0, 56], sizes = [16, 8], strides = [1, 1]} : vector<16x96xf32> to vector<16x8xf32>
    %180 = vector.shape_cast %176 : vector<16x8xf32> to vector<1x16x8xf32>
    %181 = vector.shape_cast %177 : vector<16x8xf32> to vector<1x16x8xf32>
    %182 = vector.shape_cast %178 : vector<16x8xf32> to vector<1x16x8xf32>
    %183 = vector.shape_cast %179 : vector<16x8xf32> to vector<1x16x8xf32>
    %184 = tpu.concatenate %180, %181, %182, %183 in 0 : vector<1x16x8xf32>, vector<1x16x8xf32>, vector<1x16x8xf32>, vector<1x16x8xf32> -> vector<4x16x8xf32>
    %185 = vector.shape_cast %184 : vector<4x16x8xf32> to vector<8x8x8xf32>
    %186 = arith.truncf %185 : vector<8x8x8xf32> to vector<8x8x8xbf16>
    %187 = vector.extract_strided_slice %162 {offsets = [0, 64], sizes = [16, 8], strides = [1, 1]} : vector<16x96xf32> to vector<16x8xf32>
    %188 = vector.extract_strided_slice %162 {offsets = [0, 72], sizes = [16, 8], strides = [1, 1]} : vector<16x96xf32> to vector<16x8xf32>
    %189 = vector.extract_strided_slice %162 {offsets = [0, 80], sizes = [16, 8], strides = [1, 1]} : vector<16x96xf32> to vector<16x8xf32>
    %190 = vector.extract_strided_slice %162 {offsets = [0, 88], sizes = [16, 8], strides = [1, 1]} : vector<16x96xf32> to vector<16x8xf32>
    %191 = vector.shape_cast %187 : vector<16x8xf32> to vector<1x16x8xf32>
    %192 = vector.shape_cast %188 : vector<16x8xf32> to vector<1x16x8xf32>
    %193 = vector.shape_cast %189 : vector<16x8xf32> to vector<1x16x8xf32>
    %194 = vector.shape_cast %190 : vector<16x8xf32> to vector<1x16x8xf32>
    %195 = tpu.concatenate %191, %192, %193, %194 in 0 : vector<1x16x8xf32>, vector<1x16x8xf32>, vector<1x16x8xf32>, vector<1x16x8xf32> -> vector<4x16x8xf32>
    %196 = vector.shape_cast %195 : vector<4x16x8xf32> to vector<8x8x8xf32>
    %197 = arith.truncf %196 : vector<8x8x8xf32> to vector<8x8x8xbf16>
    "tpu.trace_start"() <{level = 10 : i32, message = "gsd,gtd->gst"}> : () -> ()
    %cst_60 = arith.constant dense<0.000000e+00> : vector<8x8x8xf32>
    %198 = tpu.matmul %175, %186, %cst_60 {dimension_numbers = #tpu.dot_dimension_numbers<[2], [2], [1], [1], [0, 0, 0, 1, 1, 1], [0], [0]>} : vector<8x8x8xbf16>, vector<8x8x8xbf16>, vector<8x8x8xf32> -> vector<8x8x8xf32>
    "tpu.trace_stop"() : () -> ()
    %cst_61 = arith.constant dense<0xFF800000> : vector<8x8xf32>
    %199 = vector.multi_reduction <maximumf>, %198, %cst_61 [2] : vector<8x8x8xf32> to vector<8x8xf32>
    %200 = vector.shape_cast %199 : vector<8x8xf32> to vector<8x8x1xf32>
    %201 = vector.broadcast %200 : vector<8x8x1xf32> to vector<8x8x8xf32>
    %202 = arith.subf %198, %201 : vector<8x8x8xf32>
    %203 = math.exp %202 : vector<8x8x8xf32>
    %cst_62 = arith.constant dense<0.000000e+00> : vector<8x8xf32>
    %204 = vector.multi_reduction <add>, %203, %cst_62 [2] : vector<8x8x8xf32> to vector<8x8xf32>
    %205 = vector.shape_cast %204 : vector<8x8xf32> to vector<8x8x1xf32>
    %206 = tpu.reciprocal %205 {approx = true} : vector<8x8x1xf32> -> vector<8x8x1xf32>
    %207 = vector.broadcast %206 : vector<8x8x1xf32> to vector<8x8x8xf32>
    %208 = arith.mulf %203, %207 : vector<8x8x8xf32>
    %209 = arith.truncf %208 : vector<8x8x8xf32> to vector<8x8x8xbf16>
    "tpu.trace_start"() <{level = 10 : i32, message = "gst,gtd->gsd"}> : () -> ()
    %cst_63 = arith.constant dense<0.000000e+00> : vector<8x8x8xf32>
    %210 = tpu.matmul %209, %197, %cst_63 {dimension_numbers = #tpu.dot_dimension_numbers<[2], [1], [1], [2], [0, 0, 0, 1, 1, 2], [0], [0]>} : vector<8x8x8xbf16>, vector<8x8x8xbf16>, vector<8x8x8xf32> -> vector<8x8x8xf32>
    "tpu.trace_stop"() : () -> ()
    %211 = vector.shape_cast %210 : vector<8x8x8xf32> to vector<4x16x8xf32>
    %212 = vector.extract_strided_slice %211 {offsets = [0, 0, 0], sizes = [1, 16, 8], strides = [1, 1, 1]} : vector<4x16x8xf32> to vector<1x16x8xf32>
    %213 = vector.shape_cast %212 : vector<1x16x8xf32> to vector<16x8xf32>
    %214 = vector.extract_strided_slice %211 {offsets = [1, 0, 0], sizes = [1, 16, 8], strides = [1, 1, 1]} : vector<4x16x8xf32> to vector<1x16x8xf32>
    %215 = vector.shape_cast %214 : vector<1x16x8xf32> to vector<16x8xf32>
    %216 = vector.extract_strided_slice %211 {offsets = [2, 0, 0], sizes = [1, 16, 8], strides = [1, 1, 1]} : vector<4x16x8xf32> to vector<1x16x8xf32>
    %217 = vector.shape_cast %216 : vector<1x16x8xf32> to vector<16x8xf32>
    %218 = vector.extract_strided_slice %211 {offsets = [3, 0, 0], sizes = [1, 16, 8], strides = [1, 1, 1]} : vector<4x16x8xf32> to vector<1x16x8xf32>
    %219 = vector.shape_cast %218 : vector<1x16x8xf32> to vector<16x8xf32>
    %220 = tpu.concatenate %213, %215, %217, %219 in 1 : vector<16x8xf32>, vector<16x8xf32>, vector<16x8xf32>, vector<16x8xf32> -> vector<16x32xf32>
    %221 = arith.truncf %220 : vector<16x32xf32> to vector<16x32xbf16>
    %cst_64 = arith.constant dense<0.000000e+00> : vector<16x32xf32>
    %222 = tpu.matmul %221, %154, %cst_64 {dimension_numbers = #tpu.dot_dimension_numbers<[1], [0], [0], [1], [0, 0, 1, 1], [], []>} : vector<16x32xbf16>, vector<32x32xbf16>, vector<16x32xf32> -> vector<16x32xf32>
    %223 = vector.broadcast %144 : vector<1x32xf32> to vector<16x32xf32>
    %224 = arith.addf %222, %223 : vector<16x32xf32>
    %225 = arith.addf %140, %224 : vector<16x32xf32>
    %cst_65 = arith.constant dense<0.000000e+00> : vector<16xf32>
    %226 = vector.multi_reduction <add>, %225, %cst_65 [1] : vector<16x32xf32> to vector<16xf32>
    %227 = vector.shape_cast %226 : vector<16xf32> to vector<16x1xf32>
    %cst_66 = arith.constant 3.200000e+01 : f32
    %228 = vector.broadcast %cst_66 : f32 to vector<16x1xf32>
    %229 = arith.divf %227, %228 : vector<16x1xf32>
    %230 = vector.broadcast %229 : vector<16x1xf32> to vector<16x32xf32>
    %231 = arith.subf %225, %230 : vector<16x32xf32>
    %232 = arith.mulf %231, %231 : vector<16x32xf32>
    %cst_67 = arith.constant dense<0.000000e+00> : vector<16xf32>
    %233 = vector.multi_reduction <add>, %232, %cst_67 [1] : vector<16x32xf32> to vector<16xf32>
    %234 = vector.shape_cast %233 : vector<16xf32> to vector<16x1xf32>
    %cst_68 = arith.constant 3.200000e+01 : f32
    %235 = vector.broadcast %cst_68 : f32 to vector<16x1xf32>
    %236 = arith.divf %234, %235 : vector<16x1xf32>
    %cst_69 = arith.constant 9.99999974E-6 : f32
    %237 = vector.broadcast %cst_69 : f32 to vector<16x1xf32>
    %238 = arith.addf %236, %237 : vector<16x1xf32>
    %239 = math.rsqrt %238 : vector<16x1xf32>
    %240 = vector.broadcast %239 : vector<16x1xf32> to vector<16x32xf32>
    %241 = arith.mulf %231, %240 : vector<16x32xf32>
    %242 = vector.broadcast %145 : vector<1x32xf32> to vector<16x32xf32>
    %243 = arith.mulf %241, %242 : vector<16x32xf32>
    %244 = vector.broadcast %146 : vector<1x32xf32> to vector<16x32xf32>
    %245 = arith.addf %243, %244 : vector<16x32xf32>
    %246 = arith.truncf %245 : vector<16x32xf32> to vector<16x32xbf16>
    %cst_70 = arith.constant dense<0.000000e+00> : vector<16x64xf32>
    %247 = tpu.matmul %246, %156, %cst_70 {dimension_numbers = #tpu.dot_dimension_numbers<[1], [0], [0], [1], [0, 0, 1, 1], [], []>} : vector<16x32xbf16>, vector<32x64xbf16>, vector<16x64xf32> -> vector<16x64xf32>
    %248 = vector.broadcast %147 : vector<1x64xf32> to vector<16x64xf32>
    %249 = arith.addf %247, %248 : vector<16x64xf32>
    %cst_71 = arith.constant 0.000000e+00 : f32
    %250 = vector.broadcast %cst_71 : f32 to vector<16x64xf32>
    %251 = arith.maximumf %249, %250 : vector<16x64xf32>
    %252 = arith.truncf %251 : vector<16x64xf32> to vector<16x64xbf16>
    %cst_72 = arith.constant dense<0.000000e+00> : vector<16x32xf32>
    %253 = tpu.matmul %252, %158, %cst_72 {dimension_numbers = #tpu.dot_dimension_numbers<[1], [0], [0], [1], [0, 0, 1, 1], [], []>} : vector<16x64xbf16>, vector<64x32xbf16>, vector<16x32xf32> -> vector<16x32xf32>
    %254 = vector.broadcast %148 : vector<1x32xf32> to vector<16x32xf32>
    %255 = arith.addf %253, %254 : vector<16x32xf32>
    %256 = arith.addf %245, %255 : vector<16x32xf32>
    %cst_73 = arith.constant dense<0.000000e+00> : vector<16xf32>
    %257 = vector.multi_reduction <add>, %256, %cst_73 [1] : vector<16x32xf32> to vector<16xf32>
    %258 = vector.shape_cast %257 : vector<16xf32> to vector<16x1xf32>
    %cst_74 = arith.constant 3.200000e+01 : f32
    %259 = vector.broadcast %cst_74 : f32 to vector<16x1xf32>
    %260 = arith.divf %258, %259 : vector<16x1xf32>
    %261 = vector.broadcast %260 : vector<16x1xf32> to vector<16x32xf32>
    %262 = arith.subf %256, %261 : vector<16x32xf32>
    %263 = arith.mulf %262, %262 : vector<16x32xf32>
    %cst_75 = arith.constant dense<0.000000e+00> : vector<16xf32>
    %264 = vector.multi_reduction <add>, %263, %cst_75 [1] : vector<16x32xf32> to vector<16xf32>
    %265 = vector.shape_cast %264 : vector<16xf32> to vector<16x1xf32>
    %cst_76 = arith.constant 3.200000e+01 : f32
    %266 = vector.broadcast %cst_76 : f32 to vector<16x1xf32>
    %267 = arith.divf %265, %266 : vector<16x1xf32>
    %cst_77 = arith.constant 9.99999974E-6 : f32
    %268 = vector.broadcast %cst_77 : f32 to vector<16x1xf32>
    %269 = arith.addf %267, %268 : vector<16x1xf32>
    %270 = math.rsqrt %269 : vector<16x1xf32>
    %271 = vector.broadcast %270 : vector<16x1xf32> to vector<16x32xf32>
    %272 = arith.mulf %262, %271 : vector<16x32xf32>
    %273 = vector.broadcast %149 : vector<1x32xf32> to vector<16x32xf32>
    %274 = arith.mulf %272, %273 : vector<16x32xf32>
    %275 = vector.broadcast %150 : vector<1x32xf32> to vector<16x32xf32>
    %276 = arith.addf %274, %275 : vector<16x32xf32>
    %c2_78 = arith.constant 2 : index
    %c0_79 = arith.constant 0 : index
    %c0_80 = arith.constant 0 : index
    %277 = vector.load %arg4[%c2_78, %c0_79, %c0_80] : memref<3x8x128xf32, #tpu.memory_space<vmem>>, vector<1x8x128xf32>
    %278 = vector.shape_cast %277 : vector<1x8x128xf32> to vector<8x128xf32>
    %279 = vector.extract_strided_slice %278 {offsets = [0, 0], sizes = [1, 32], strides = [1, 1]} : vector<8x128xf32> to vector<1x32xf32>
    %280 = vector.broadcast %279 : vector<1x32xf32> to vector<16x32xf32>
    %281 = arith.mulf %276, %280 : vector<16x32xf32>
    %cst_81 = arith.constant dense<0.000000e+00> : vector<16xf32>
    %282 = vector.multi_reduction <add>, %281, %cst_81 [1] : vector<16x32xf32> to vector<16xf32>
    %283 = vector.shape_cast %282 : vector<16xf32> to vector<16x1xf32>
    %284 = vector.extract_strided_slice %278 {offsets = [1, 0], sizes = [1, 1], strides = [1, 1]} : vector<8x128xf32> to vector<1x1xf32>
    %285 = vector.broadcast %284 : vector<1x1xf32> to vector<16x1xf32>
    %286 = arith.addf %283, %285 : vector<16x1xf32>
    %c0_82 = arith.constant 0 : index
    %c0_83 = arith.constant 0 : index
    %287 = vector.load %arg5[%c0_82, %c0_83] : memref<16x1xf32, #tpu.memory_space<vmem>>, vector<16x1xf32>
    tpu.vector_store %arg5[%c0_82, %c0_83], %286 {strides = array<i32>} : memref<16x1xf32, #tpu.memory_space<vmem>>, vector<16x1xf32>,
    return
  }
}

</mosaic_0001>

<bundles_post_ra>
// kernel: tpu_custom_call.1
= control target key start
LH: loop header
LB: loop body
LE: loop exit
PB: predicated region body
PF: predicated region fallthrough
CT: control target
= control target key end

     0   :  { %10 = vsyncpa [#allocation3], 0  ;;  %s4020_s0 = inlined_call_operand.hbm [shape: f32[2,8,32], index: 0, kind: input, shape index: {}]   ;;  %s4021_s1 = inlined_call_operand.vmem [shape: f32[2,1,32], index: 1, kind: input, shape index: {}]   ;;  %s4022_s2 = inlined_call_operand.vmem [shape: bf16[2,3,32,128], index: 2, kind: input, shape index: {}]   ;;  %s4023_s3 = inlined_call_operand.vmem [shape: bf16[2,64,32], index: 3, kind: input, shape index: {}]   ;;  %s4024_s4 = inlined_call_operand.hbm [shape: f32[3,8,128], index: 4, kind: input, shape index: {}]   ;;  %s4025_s5 = inlined_call_operand.vmem [shape: f32[16,1], index: 5, kind: output, shape index: {}]  }
   0x1   :  { %11 = vsyncpa [#allocation5], 0  ;;  %s3357_s18 = smov [#allocation2]   ;;  %s3309_s22 = scalar_lea.hbm %s4020_s0, 256 }
   0x2   :  { %s17_s19 = sshll.u32 %s3357_s18, 4  ;;  %p3310_p0 = scmp.ne.s32.totalorder %s4020_s0, %s3309_s22  ;;  %s18_s19 = int_to_ptr.vmem [resolvable:$true] %s17_s19 }
   0x3   :  { %p3313_p1 = scmp.lt.u32.totalorder %s3309_s22, %s4020_s0 }
   0x5   :  { %p3315_p2 = pnand %p3313_p1, %p3310_p0 }
   0x7   :  { %3318 = shalt.err (!%p3315_p2)
}
   0x8   :  { %s3319_s27 = scalar_lea.vmem %s18_s19, 256  ;;  %p3324_p4 = scmp.lt.s32.totalorder %s18_s19, %s18_s19 }
   0x9   :  { %p3320_p3 = scmp.ne.s32.totalorder %s18_s19, %s3319_s27  ;;  %p3325_p5 = scmp.lt.s32.totalorder %s3319_s27, %s3319_s27 }
   0xb   :  { %p3326_p6 = por %p3325_p5, %p3324_p4 }
   0xd   :  { %p3327_p7 = pnand %p3326_p6, %p3320_p3 }
   0xf   :  { %3330 = shalt.err (!%p3327_p7)
}
  0x10   :  { %s3358_s28 = smov 128   ;;  %s3359_s29 = smov 8  }
  0x11   :  { %23 = dma.hbm_to_vmem [thread:$0]  %s4020_s0, 256, %s18_s19, [#allocation3], %s3358_s28, %s3358_s28, %s3359_s29  }
  0x12   :  { %s3360_s7 = smov [#allocation4]   ;;  %s3331_s11 = scalar_lea.hbm %s4024_s4, 384 }
  0x13   :  { %s35_s8 = sshll.u32 %s3360_s7, 4  ;;  %p3332_p8 = scmp.ne.s32.totalorder %s4024_s4, %s3331_s11  ;;  %s36_s8 = int_to_ptr.vmem [resolvable:$true] %s35_s8 }
  0x14   :  { %p3335_p9 = scmp.lt.u32.totalorder %s3331_s11, %s4024_s4 }
  0x16   :  { %p3337_p10 = pnand %p3335_p9, %p3332_p8 }
  0x18   :  { %3340 = shalt.err (!%p3337_p10)
}
  0x19   :  { %s3341_s16 = scalar_lea.vmem %s36_s8, 384  ;;  %p3346_p12 = scmp.lt.s32.totalorder %s36_s8, %s36_s8 }
  0x1a   :  { %p3342_p11 = scmp.ne.s32.totalorder %s36_s8, %s3341_s16  ;;  %p3347_p13 = scmp.lt.s32.totalorder %s3341_s16, %s3341_s16 }
  0x1c   :  { %p3348_p0 = por %p3347_p13, %p3346_p12 }
  0x1e   :  { %p3349_p1 = pnand %p3348_p0, %p3342_p11 }
  0x20   :  { %3352 = shalt.err (!%p3349_p1)
}
  0x21   :  { %41 = dma.hbm_to_vmem [thread:$0]  %s4024_s4, 384, %s36_s8, [#allocation5], %s3358_s28, %s3358_s28, %s3359_s29  }
  0x22   :  { %3353 = dma.done.wait [#allocation3], 256  }
  0x23   :  { %3354 = vsyncadd [#allocation3], 4294967040 }
  0x24   :  { %3355 = dma.done.wait [#allocation5], 384  }
  0x25   :  { %3356 = vsyncadd [#allocation5], 4294966912  ;;  %v3361_v0 = vmov 0.0   ;;  %vm3362_vm0 = vmmov 0   ;;  %v3209_v1 = vld [vmem:[%s4022_s2] sm:$0xff]   ;;  %v3210_v2 = vld [vmem:[%s4022_s2 + $0x8] sm:$0xff]   ;;  %v91_v10 = vlaneseq }
  0x26   :  { %2902 = vmatprep.subr.bf16.mxu1 %v3361_v0  ;;  %2906 = vmatprep.mubr.msk.bf16.mxu1 %vm3362_vm0, %v3361_v0  ;;  %v49_v3 = vld [vmem:[#allocation2] sm:$0xff]  ;;  %v50_v4 = vld [vmem:[#allocation2 + $0x8] sm:$0xff]  ;;  %vm107_vm1 = vcmask 261120   ;;  %v3460_v13 = vld [vmem:[#allocation4] sm:$0xff]  ;;  %s3364_s25 = smov 120   ;;  %s3365_s26 = smov 104  }
  0x27   :  { %2916 = vmatprep.subr.bf16.mxu0 %v3361_v0  ;;  %2918 = vmatprep.mubr.msk.bf16.mxu0 %vm3362_vm0, %v3361_v0  ;;  %v2720_v5 = vld [vmem:[%s4021_s1] ss:$0 sm:$0xff]  ;;  %v2721_v6 = vld [vmem:[%s4021_s1 + $0x1] ss:$0 sm:$0xff]  ;;  %v3455_v11 = vshrl.u32 %v91_v10, 7  ;;  %s3363_s1 = smov 112  }
  0x28   :  { %2903 = vmatpush3.bf16.msra.mxu1 %v3209_v1  ;;  %v3445_v7 = vadd.f32 %v2720_v5, %v49_v3  ;;  %v3447_v8 = vadd.f32 %v2721_v6, %v50_v4  ;;  %s3366_s27 = smov 96   ;;  %vm199_vm2 = vcmask 64512   ;;  %s3367_s28 = smov 64   ;;  %vm690_vm3 = vcmask 1043456  }
  0x29   :  { %2904 = vmatprep.subr.bf16.mxu1 %v3361_v0  ;;  %v3458_v12 = vsub.s32 0, %v3455_v11  ;;  %s3368_s9 = smov 16   ;;  %s3369_s10 = smov 24   ;;  %vm1096_vm4 = vcmask 130048   ;;  %vm1099_vm5 = vcmask 195584   ;;  %vm1296_vm6 = vcmask 523264  }
  0x2a   :  { %v90_v9 = vpack.c.bf16 %v3447_v8, %v3445_v7  ;;  %vm2711_vm7 = vcmask 7168  }
  0x2b   :  { %v94_v14 = vrot.slane %v3460_v13, %v3458_v12 }
  0x2c   :  { %2905 = vmatpush3.bf16.msra.mxu1 %v3210_v2 }
  0x2d   :  { %2910 = vmatprep.subr.bf16.mxu1 %v3361_v0 }
  0x2f   :  { %2907 = vmatmul.mubr.msk.bf16.vlgmr.msra.gmra.mrb[0].mxu1 %vm107_vm1, %v90_v9 }
  0x30   :  { %2912 = vmatprep.mubr.msk.bf16.mxu1 %vm3362_vm0, %v3361_v0 }
 0x102   :  { %v145_v15 = vpop.f32.mrb[0].mxu1 }
 0x103   :  { %v146_v16 = vadd.f32 %v145_v15, %v94_v14  ;;  %v2908_v17 = vpop.f32.mrb[1].mxu1 }
 0x104   :  { %v148_v18 = vpop.f32.mrb[2].mxu1 }
 0x105   :  { %160 = vrot.lane.b32.xlu1 %v146_v16, %s3363_s1  ;;  %154 = vrot.lane.b32.xlu0 %v146_v16, %s3364_s25  ;;  %v2909_v19 = vpop.f32.mrb[3].mxu1  ;;  %v149_v20 = vadd.f32 %v148_v18, %v94_v14  ;;  %v188_v21 = vpack.c.bf16 %v146_v16, %v146_v16  ;;  %v172_v39 = vmul.f32 0.35355338, %v146_v16 }
 0x107   :  { %v3470_v22 = vpack.c.bf16 %v149_v20, %v149_v20  ;;  %v173_v40 = vmul.f32 0.35355338, %v149_v20  ;;  %v180_v41 = vpack.c.bf16 %v172_v39, %v172_v39 }
 0x109   :  { %162 = vrot.lane.b32.xlu1 %v149_v20, %s3363_s1  ;;  %156 = vrot.lane.b32.xlu0 %v149_v20, %s3364_s25  ;;  %v181_v42 = vpack.c.bf16 %v173_v40, %v173_v40 }
 0x10d   :  { %168 = vrot.lane.b32.xlu1 %v149_v20, %s3365_s26  ;;  %166 = vrot.lane.b32.xlu0 %v146_v16, %s3365_s26 }
 0x111   :  { %197 = vrot.lane.b32.xlu0 %v188_v21, %s3366_s27  ;;  %247 = vrot.lane.b32.xlu1 %v3470_v22, %s3366_s27 }
 0x177   :  { %v161_v23 = vpop.permute.xlu1 %160  ;;  %v155_v24 = vpop.permute.xlu0 %154 }
 0x178   :  { %v3475_v25 = vpack.c.bf16 %v155_v24, %v155_v24  ;;  %v3479_v28 = vpack.c.bf16 %v161_v23, %v161_v23  ;;  %v174_v45 = vmul.f32 0.35355338, %v155_v24  ;;  %v176_v53 = vmul.f32 0.35355338, %v161_v23 }
 0x17a   :  { %296 = vrot.lane.b32.xlu0 %v3475_v25, %s3366_s27  ;;  %v182_v49 = vpack.c.bf16 %v174_v45, %v174_v45  ;;  %v184_v57 = vpack.c.bf16 %v176_v53, %v176_v53 }
 0x17b   :  { %v163_v26 = vpop.permute.xlu1 %162  ;;  %v157_v27 = vpop.permute.xlu0 %156 }
 0x17c   :  { %v3481_v29 = vpack.c.bf16 %v157_v27, %v157_v27  ;;  %v3489_v32 = vpack.c.bf16 %v163_v26, %v163_v26  ;;  %v175_v50 = vmul.f32 0.35355338, %v157_v27  ;;  %v177_v58 = vmul.f32 0.35355338, %v163_v26 }
 0x17e   :  { %394 = vrot.lane.b32.xlu0 %v3479_v28, %s3366_s27  ;;  %345 = vrot.lane.b32.xlu1 %v3481_v29, %s3366_s27  ;;  %v183_v54 = vpack.c.bf16 %v175_v50, %v175_v50  ;;  %v185_v61 = vpack.c.bf16 %v177_v58, %v177_v58 }
 0x17f   :  { %v3487_v30 = vpop.permute.xlu1 %168  ;;  %v167_v31 = vpop.permute.xlu0 %166 }
 0x180   :  { %v3491_v33 = vpack.c.bf16 %v167_v31, %v167_v31  ;;  %v3499_v36 = vpack.c.bf16 %v3487_v30, %v3487_v30  ;;  %v178_v62 = vmul.f32 0.35355338, %v167_v31  ;;  %v179_v2 = vmul.f32 0.35355338, %v3487_v30 }
 0x182   :  { %492 = vrot.lane.b32.xlu0 %v3491_v33, %s3366_s27  ;;  %443 = vrot.lane.b32.xlu1 %v3489_v32, %s3366_s27  ;;  %v186_v3 = vpack.c.bf16 %v178_v62, %v178_v62  ;;  %v187_v5 = vpack.c.bf16 %v179_v2, %v179_v2 }
 0x183   :  { %v198_v34 = vpop.permute.xlu0 %197  ;;  %v248_v35 = vpop.permute.xlu1 %247 }
 0x184   :  { %v204_v37 = vsel %vm199_vm2, %v198_v34, 0  ;;  %v253_v38 = vsel %vm199_vm2, %v248_v35, 0 }
 0x185   :  { %2911 = vmatpush3.bf16.xpose.msra.mxu1 %v204_v37  ;;  %2917 = vmatpush3.bf16.xpose.msra.mxu0 %v253_v38 }
 0x186   :  { %541 = vrot.lane.b32.xlu1 %v3499_v36, %s3366_s27  ;;  %2922 = vmatprep.subr.bf16.mxu1 %v3361_v0 }
 0x187   :  { %2928 = vmatprep.subr.bf16.mxu0 %v3361_v0 }
 0x18a   :  { %685 = vrot.lane.b32.xlu1 %v188_v21, %s3367_s28 }
 0x18c   :  { %2913 = vmatmul.mubr.msk.bf16.vlgmr.msra.gmra.mrb[4].mxu1 %vm199_vm2, %v180_v41  ;;  %2919 = vmatmul.mubr.msk.bf16.vlgmr.msra.gmra.mrb[0].mxu0 %vm199_vm2, %v181_v42 }
 0x18d   :  { %2924 = vmatprep.mubr.msk.bf16.mxu1 %vm3362_vm0, %v3361_v0  ;;  %2930 = vmatprep.mubr.msk.bf16.mxu0 %vm3362_vm0, %v3361_v0 }
 0x1ec   :  { %v297_v43 = vpop.permute.xlu0 %296 }
 0x1ed   :  { %v302_v44 = vsel %vm199_vm2, %v297_v43, 0 }
 0x1ee   :  { %2923 = vmatpush3.bf16.xpose.msra.mxu1 %v302_v44 }
 0x1ef   :  { %2934 = vmatprep.subr.bf16.mxu1 %v3361_v0 }
 0x1f0   :  { %v346_v46 = vpop.permute.xlu1 %345  ;;  %v395_v48 = vpop.permute.xlu0 %394 }
 0x1f1   :  { %v351_v47 = vsel %vm199_vm2, %v346_v46, 0  ;;  %v400_v51 = vsel %vm199_vm2, %v395_v48, 0 }
 0x1f2   :  { %2929 = vmatpush3.bf16.xpose.msra.mxu0 %v351_v47 }
 0x1f3   :  { %2940 = vmatprep.subr.bf16.mxu0 %v3361_v0 }
 0x1f4   :  { %v444_v52 = vpop.permute.xlu1 %443  ;;  %v493_v56 = vpop.permute.xlu0 %492 }
 0x1f5   :  { %2925 = vmatmul.mubr.msk.bf16.vlgmr.msra.gmra.mrb[8].mxu1 %vm199_vm2, %v182_v49  ;;  %v449_v55 = vsel %vm199_vm2, %v444_v52, 0  ;;  %v498_v60 = vsel %vm199_vm2, %v493_v56, 0 }
 0x1f6   :  { %2935 = vmatpush3.bf16.xpose.msra.mxu1 %v400_v51  ;;  %2936 = vmatprep.mubr.msk.bf16.mxu1 %vm3362_vm0, %v3361_v0 }
 0x1f7   :  { %2946 = vmatprep.subr.bf16.mxu1 %v3361_v0 }
 0x1f8   :  { %v542_v59 = vpop.permute.xlu1 %541 }
 0x1f9   :  { %2931 = vmatmul.mubr.msk.bf16.vlgmr.msra.gmra.mrb[4].mxu0 %vm199_vm2, %v183_v54  ;;  %v547_v63 = vsel %vm199_vm2, %v542_v59, 0 }
 0x1fa   :  { %2941 = vmatpush3.bf16.xpose.msra.mxu0 %v449_v55  ;;  %2942 = vmatprep.mubr.msk.bf16.mxu0 %vm3362_vm0, %v3361_v0 }
 0x1fb   :  { %2952 = vmatprep.subr.bf16.mxu0 %v3361_v0 }
 0x1fc   :  { %v686_v1 = vpop.permute.xlu1 %685 }
 0x1fd   :  { %2937 = vmatmul.mubr.msk.bf16.vlgmr.msra.gmra.mrb[12].mxu1 %vm199_vm2, %v184_v57  ;;  %v692_v4 = vsel %vm690_vm3, %v686_v1, 0 }
 0x1fe   :  { %2947 = vmatpush3.bf16.xpose.msra.mxu1 %v498_v60  ;;  %2948 = vmatprep.mubr.msk.bf16.mxu1 %vm3362_vm0, %v3361_v0 }
 0x1ff   :  { %2958 = vmatprep.subr.bf16.mxu1 %v3361_v0 }
 0x201   :  { %2943 = vmatmul.mubr.msk.bf16.vlgmr.msra.gmra.mrb[8].mxu0 %vm199_vm2, %v185_v61 }
 0x202   :  { %2953 = vmatpush3.bf16.xpose.msra.mxu0 %v547_v63  ;;  %2954 = vmatprep.mubr.msk.bf16.mxu0 %vm3362_vm0, %v3361_v0 }
 0x203   :  { %2964 = vmatprep.subr.bf16.mxu0 %v3361_v0 }
 0x205   :  { %2949 = vmatmul.mubr.msk.bf16.vlgmr.msra.gmra.mrb[16].mxu1 %vm199_vm2, %v186_v3 }
 0x206   :  { %2959 = vmatpush3.bf16.msra.mxu1 %v692_v4  ;;  %2960 = vmatprep.mubr.msk.bf16.mxu1 %vm3362_vm0, %v3361_v0 }
 0x207   :  { %2970 = vmatprep.subr.bf16.mxu1 %v3361_v0 }
 0x209   :  { %2955 = vmatmul.mubr.msk.bf16.vlgmr.msra.gmra.mrb[12].mxu0 %vm199_vm2, %v187_v5 }
 0x20a   :  { %2966 = vmatprep.mubr.msk.bf16.mxu0 %vm3362_vm0, %v3361_v0 }
 0x25f   :  { %v240_v6 = vpop.f32.mrb[4].mxu1  ;;  %v289_v9 = vpop.f32.mrb[0].mxu0 }
 0x260   :  { %v2914_v10 = vpop.f32.mrb[5].mxu1  ;;  %v2920_v14 = vpop.f32.mrb[1].mxu0  ;;  %v592_v15 = vsel %vm199_vm2, %v289_v9, -inf  ;;  %v589_v16 = vsel %vm199_vm2, %v240_v6, -inf }
 0x261   :  { %593 = vmax.xlane.f32.xlu1 %v592_v15  ;;  %v292_v17 = vpop.f32.mrb[2].mxu0  ;;  %590 = vmax.xlane.f32.xlu0 %v589_v16  ;;  %v243_v18 = vpop.f32.mrb[6].mxu1 }
 0x262   :  { %v2915_v19 = vpop.f32.mrb[7].mxu1  ;;  %v2921_v20 = vpop.f32.mrb[3].mxu0 }
 0x2c8   :  { %v338_v21 = vpop.f32.mrb[8].mxu1 }
 0x2c9   :  { %v2926_v23 = vpop.f32.mrb[9].mxu1  ;;  %v595_v24 = vsel %vm199_vm2, %v338_v21, -inf }
 0x2ca   :  { %596 = vmax.xlane.f32.xlu0 %v595_v24  ;;  %v341_v26 = vpop.f32.mrb[10].mxu1 }
 0x2cb   :  { %v2927_v27 = vpop.f32.mrb[11].mxu1 }
 0x2cc   :  { %v387_v30 = vpop.f32.mrb[4].mxu0 }
 0x2cd   :  { %v2932_v31 = vpop.f32.mrb[5].mxu0  ;;  %v598_v34 = vsel %vm199_vm2, %v387_v30, -inf }
 0x2ce   :  { %v390_v35 = vpop.f32.mrb[6].mxu0  ;;  %599 = vmax.xlane.f32.xlu0 %v598_v34 }
 0x2cf   :  { %v2933_v37 = vpop.f32.mrb[7].mxu0 }
 0x2d0   :  { %v3551_v38 = vpop.f32.mrb[12].mxu1 }
 0x2d1   :  { %v2938_v39 = vpop.f32.mrb[13].mxu1  ;;  %v601_v40 = vsel %vm199_vm2, %v3551_v38, -inf }
 0x2d2   :  { %602 = vmax.xlane.f32.xlu1 %v601_v40  ;;  %v439_v41 = vpop.f32.mrb[14].mxu1 }
 0x2d3   :  { %v2939_v42 = vpop.f32.mrb[15].mxu1 }
 0x2d4   :  { %v3555_v43 = vpop.f32.mrb[8].mxu0 }
 0x2d5   :  { %v2944_v44 = vpop.f32.mrb[9].mxu0  ;;  %v604_v45 = vsel %vm199_vm2, %v3555_v43, -inf }
 0x2d6   :  { %v488_v46 = vpop.f32.mrb[10].mxu0  ;;  %605 = vmax.xlane.f32.xlu0 %v604_v45 }
 0x2d7   :  { %v2945_v47 = vpop.f32.mrb[11].mxu0 }
 0x2d8   :  { %v534_v48 = vpop.f32.mrb[16].mxu1 }
 0x2d9   :  { %v2950_v49 = vpop.f32.mrb[17].mxu1  ;;  %v607_v50 = vsel %vm199_vm2, %v534_v48, -inf }
 0x2da   :  { %608 = vmax.xlane.f32.xlu1 %v607_v50  ;;  %v537_v51 = vpop.f32.mrb[18].mxu1 }
 0x2db   :  { %v2951_v52 = vpop.f32.mrb[19].mxu1 }
 0x2dc   :  { %v583_v53 = vpop.f32.mrb[12].mxu0 }
 0x2dd   :  { %v2956_v54 = vpop.f32.mrb[13].mxu0  ;;  %v610_v55 = vsel %vm199_vm2, %v583_v53, -inf }
 0x2de   :  { %v586_v56 = vpop.f32.mrb[14].mxu0  ;;  %611 = vmax.xlane.f32.xlu0 %v610_v55 }
 0x2df   :  { %v2957_v57 = vpop.f32.mrb[15].mxu0 }
 0x2eb   :  { %782 = vrot.lane.b32.xlu1 %v3475_v25, %s3367_s28 }
 0x2ee   :  { %v594_v58 = vpop.xlane.xlu1 %593  ;;  %v591_v59 = vpop.xlane.xlu0 %590 }
 0x2ef   :  { %830 = vrot.lane.b32.xlu1 %v3481_v29, %s3367_s28  ;;  %v614_v60 = vsub.f32 %v289_v9, %v594_v58  ;;  %v613_v61 = vsub.f32 %v240_v6, %v591_v59 }
 0x2f1   :  { %v623_v62 = vmul.f32 1.442695, %v614_v60  ;;  %v621_v63 = vmul.f32 1.442695, %v613_v61 }
 0x2f3   :  { %3229 = vpow2.f32 %v623_v62 }
 0x2f4   :  { %734 = vrot.lane.b32.xlu0 %v3470_v22, %s3367_s28  ;;  %3231 = vpow2.f32 %v621_v63 }
 0x2fd   :  { %v3230_v1 = vpop.eup %3229 }
 0x2fe   :  { %v3232_v2 = vpop.eup %3231  ;;  %v640_v3 = vsel %vm199_vm2, %v3230_v1, 0.0 }
 0x2ff   :  { %v637_v25 = vsel %vm199_vm2, %v3232_v2, 0.0 }
 0x313   :  { %641 = vadd.xlane.f32.xlu0 %v640_v3  ;;  %638 = vadd.xlane.f32.xlu1 %v637_v25 }
 0x357   :  { %v597_v29 = vpop.xlane.xlu0 %596 }
 0x358   :  { %v615_v4 = vsub.f32 %v338_v21, %v597_v29 }
 0x35a   :  { %v625_v5 = vmul.f32 1.442695, %v615_v4 }
 0x35b   :  { %v600_v22 = vpop.xlane.xlu0 %599 }
 0x35c   :  { %3233 = vpow2.f32 %v625_v5  ;;  %v616_v10 = vsub.f32 %v387_v30, %v600_v22 }
 0x35e   :  { %v627_v9 = vmul.f32 1.442695, %v616_v10 }
 0x35f   :  { %v603_v21 = vpop.xlane.xlu1 %602 }
 0x360   :  { %3235 = vpow2.f32 %v627_v9  ;;  %v617_v23 = vsub.f32 %v3551_v38, %v603_v21 }
 0x362   :  { %v629_v27 = vmul.f32 1.442695, %v617_v23 }
 0x363   :  { %v606_v14 = vpop.xlane.xlu0 %605 }
 0x364   :  { %v618_v26 = vsub.f32 %v3555_v43, %v606_v14  ;;  %3237 = vpow2.f32 %v629_v27 }
 0x366   :  { %v3569_v6 = vpop.eup %3233  ;;  %v631_v31 = vmul.f32 1.442695, %v618_v26 }
 0x367   :  { %v643_v15 = vsel %vm199_vm2, %v3569_v6, 0.0  ;;  %v609_v24 = vpop.xlane.xlu1 %608 }
 0x368   :  { %644 = vadd.xlane.f32.xlu1 %v643_v15  ;;  %v619_v30 = vsub.f32 %v534_v48, %v609_v24  ;;  %3239 = vpow2.f32 %v631_v31 }
 0x36a   :  { %v3573_v16 = vpop.eup %3235  ;;  %v633_v34 = vmul.f32 1.442695, %v619_v30 }
 0x36b   :  { %v612_v17 = vpop.xlane.xlu0 %611  ;;  %v646_v18 = vsel %vm199_vm2, %v3573_v16, 0.0  ;;  %v783_v39 = vpop.permute.xlu1 %782 }
 0x36c   :  { %647 = vadd.xlane.f32.xlu0 %v646_v18  ;;  %v620_v35 = vsub.f32 %v583_v53, %v612_v17  ;;  %3241 = vpow2.f32 %v633_v34  ;;  %v788_v55 = vsel %vm690_vm3, %v783_v39, 0 }
 0x36e   :  { %v635_v37 = vmul.f32 1.442695, %v620_v35 }
 0x36f   :  { %v735_v19 = vpop.permute.xlu0 %734  ;;  %v831_v40 = vpop.permute.xlu1 %830 }
 0x370   :  { %v740_v20 = vsel %vm690_vm3, %v735_v19, 0  ;;  %3243 = vpow2.f32 %v635_v37  ;;  %v836_v54 = vsel %vm690_vm3, %v831_v40, 0 }
 0x371   :  { %2965 = vmatpush3.bf16.msra.mxu0 %v740_v20 }
 0x372   :  { %2976 = vmatprep.subr.bf16.mxu0 %v3361_v0 }
 0x379   :  { %926 = vrot.lane.b32.xlu1 %v3489_v32, %s3367_s28  ;;  %v3585_v32 = vpop.eup %3237 }
 0x37a   :  { %v649_v38 = vsel %vm199_vm2, %v3585_v32, 0.0 }
 0x382   :  { %878 = vrot.lane.b32.xlu0 %v3479_v28, %s3367_s28  ;;  %v3587_v28 = vpop.eup %3239 }
 0x383   :  { %v3591_v41 = vpop.eup %3241  ;;  %v652_v44 = vsel %vm199_vm2, %v3587_v28, 0.0 }
 0x384   :  { %v655_v45 = vsel %vm199_vm2, %v3591_v41, 0.0  ;;  %v3597_v46 = vpop.eup %3243 }
 0x385   :  { %v658_v47 = vsel %vm199_vm2, %v3597_v46, 0.0 }
 0x39d   :  { %650 = vadd.xlane.f32.xlu1 %v649_v38 }
 0x3a0   :  { %v642_v42 = vpop.xlane.xlu0 %641  ;;  %v639_v43 = vpop.xlane.xlu1 %638 }
 0x3a1   :  { %3245 = vrcp.f32 %v642_v42  ;;  %653 = vadd.xlane.f32.xlu0 %v652_v44  ;;  %656 = vadd.xlane.f32.xlu1 %v655_v45 }
 0x3a2   :  { %3247 = vrcp.f32 %v639_v43 }
 0x3a5   :  { %659 = vadd.xlane.f32.xlu0 %v658_v47  ;;  %v3211_v47 = vld [vmem:[%s4022_s2 + $0x10] sm:$0xff]  }
 0x3ab   :  { %v3246_v48 = vpop.eup %3245 }
 0x3ac   :  { %v3248_v49 = vpop.eup %3247  ;;  %v670_v50 = vmul.f32 %v3246_v48, %v3230_v1 }
 0x3ad   :  { %v669_v51 = vmul.f32 %v3248_v49, %v3232_v2 }
 0x3ae   :  { %v678_v52 = vpack.c.bf16 %v670_v50, %v670_v50 }
 0x3af   :  { %v677_v53 = vpack.c.bf16 %v669_v51, %v669_v51 }
 0x3b0   :  { %2967 = vmatmul.mubr.msk.bf16.vlgmr.msra.gmra.mrb[16].mxu0 %vm199_vm2, %v678_v52 }
 0x3b1   :  { %2961 = vmatmul.mubr.msk.bf16.vlgmr.msra.gmra.mrb[20].mxu1 %vm199_vm2, %v677_v53  ;;  %2977 = vmatpush3.bf16.msra.mxu0 %v836_v54  ;;  %v3212_v53 = vld [vmem:[%s4022_s2 + $0x18] sm:$0xff]  }
 0x3b2   :  { %2971 = vmatpush3.bf16.msra.mxu1 %v788_v55  ;;  %1022 = vrot.lane.b32.xlu1 %v3499_v36, %s3367_s28 }
 0x3b3   :  { %2972 = vmatprep.mubr.msk.bf16.mxu1 %vm3362_vm0, %v3361_v0  ;;  %2982 = vmatprep.subr.bf16.mxu1 %v3361_v0 }
 0x3b4   :  { %2978 = vmatprep.mubr.msk.bf16.mxu0 %vm3362_vm0, %v3361_v0  ;;  %2988 = vmatprep.subr.bf16.mxu0 %v3361_v0 }
 0x3bb   :  { %974 = vrot.lane.b32.xlu0 %v3491_v33, %s3367_s28 }
 0x3f5   :  { %v645_v56 = vpop.xlane.xlu1 %644 }
 0x3f6   :  { %3249 = vrcp.f32 %v645_v56 }
 0x3f9   :  { %v648_v57 = vpop.xlane.xlu0 %647  ;;  %v927_v1 = vpop.permute.xlu1 %926 }
 0x3fa   :  { %3251 = vrcp.f32 %v648_v57  ;;  %v932_v2 = vsel %vm690_vm3, %v927_v1, 0 }
 0x3fd   :  { %v879_v59 = vpop.permute.xlu0 %878 }
 0x3fe   :  { %v884_v63 = vsel %vm690_vm3, %v879_v59, 0 }
 0x400   :  { %v3250_v58 = vpop.eup %3249 }
 0x401   :  { %v671_v36 = vmul.f32 %v3250_v58, %v3569_v6 }
 0x403   :  { %v679_v60 = vpack.c.bf16 %v671_v36, %v671_v36 }
 0x404   :  { %v3252_v61 = vpop.eup %3251 }
 0x405   :  { %v672_v62 = vmul.f32 %v3252_v61, %v3573_v16  ;;  %2973 = vmatmul.mubr.msk.bf16.vlgmr.msra.gmra.mrb[24].mxu1 %vm199_vm2, %v679_v60 }
 0x406   :  { %2983 = vmatpush3.bf16.msra.mxu1 %v884_v63  ;;  %2984 = vmatprep.mubr.msk.bf16.mxu1 %vm3362_vm0, %v3361_v0 }
 0x407   :  { %v680_v33 = vpack.c.bf16 %v672_v62, %v672_v62  ;;  %2994 = vmatprep.subr.bf16.mxu1 %v3361_v0 }
 0x409   :  { %2979 = vmatmul.mubr.msk.bf16.vlgmr.msra.gmra.mrb[20].mxu0 %vm199_vm2, %v680_v33 }
 0x40a   :  { %2989 = vmatpush3.bf16.msra.mxu0 %v932_v2  ;;  %2990 = vmatprep.mubr.msk.bf16.mxu0 %vm3362_vm0, %v3361_v0 }
 0x40b   :  { %3000 = vmatprep.subr.bf16.mxu0 %v3361_v0 }
 0x42a   :  { %v651_v3 = vpop.xlane.xlu1 %650 }
 0x42b   :  { %3253 = vrcp.f32 %v651_v3 }
 0x42e   :  { %v654_v25 = vpop.xlane.xlu0 %653  ;;  %v657_v29 = vpop.xlane.xlu1 %656 }
 0x42f   :  { %3255 = vrcp.f32 %v654_v25 }
 0x430   :  { %3257 = vrcp.f32 %v657_v29 }
 0x432   :  { %v660_v4 = vpop.xlane.xlu0 %659  ;;  %v1023_v17 = vpop.permute.xlu1 %1022 }
 0x433   :  { %3259 = vrcp.f32 %v660_v4  ;;  %v1028_v21 = vsel %vm690_vm3, %v1023_v17, 0 }
 0x435   :  { %v3254_v5 = vpop.eup %3253 }
 0x436   :  { %v673_v22 = vmul.f32 %v3254_v5, %v3585_v32  ;;  %v975_v10 = vpop.permute.xlu0 %974 }
 0x437   :  { %v980_v16 = vsel %vm690_vm3, %v975_v10, 0 }
 0x438   :  { %v681_v9 = vpack.c.bf16 %v673_v22, %v673_v22 }
 0x439   :  { %v3256_v6 = vpop.eup %3255 }
 0x43a   :  { %v3258_v14 = vpop.eup %3257  ;;  %v674_v15 = vmul.f32 %v3256_v6, %v3587_v28  ;;  %2985 = vmatmul.mubr.msk.bf16.vlgmr.msra.gmra.mrb[28].mxu1 %vm199_vm2, %v681_v9 }
 0x43b   :  { %2995 = vmatpush3.bf16.msra.mxu1 %v980_v16  ;;  %2996 = vmatprep.mubr.msk.bf16.mxu1 %vm3362_vm0, %v3361_v0  ;;  %v675_v18 = vmul.f32 %v3258_v14, %v3591_v41 }
 0x43c   :  { %v682_v19 = vpack.c.bf16 %v674_v15, %v674_v15  ;;  %3006 = vmatprep.subr.bf16.mxu1 %v3361_v0 }
 0x43d   :  { %v3260_v20 = vpop.eup %3259  ;;  %v683_v24 = vpack.c.bf16 %v675_v18, %v675_v18 }
 0x43e   :  { %2991 = vmatmul.mubr.msk.bf16.vlgmr.msra.gmra.mrb[24].mxu0 %vm199_vm2, %v682_v19  ;;  %v676_v23 = vmul.f32 %v3260_v20, %v3597_v46  ;;  %v3668_v20 = vsub.s32 1, %v3455_v11 }
 0x43f   :  { %3001 = vmatpush3.bf16.msra.mxu0 %v1028_v21  ;;  %3002 = vmatprep.mubr.msk.bf16.mxu0 %vm3362_vm0, %v3361_v0 }
 0x440   :  { %3014 = vmatprep.subr.bf16.mxu0 %v3361_v0  ;;  %v684_v26 = vpack.c.bf16 %v676_v23, %v676_v23  ;;  %v1106_v21 = vrot.slane %v3460_v13, %v3668_v20 }
 0x442   :  { %2997 = vmatmul.mubr.msk.bf16.vlgmr.msra.gmra.mrb[32].mxu1 %vm199_vm2, %v683_v24 }
 0x443   :  { %3010 = vmatprep.mubr.msk.bf16.mxu1 %vm3362_vm0, %v3361_v0  ;;  %3007 = vmatpush3.bf16.msra.mxu1 %v3211_v47  ;;  %v3215_v47 = vld [vmem:[%s4023_s3] sm:$0xff]  }
 0x444   :  { %3008 = vmatprep.subr.bf16.mxu1 %v3361_v0 }
 0x446   :  { %3003 = vmatmul.mubr.msk.bf16.vlgmr.msra.gmra.mrb[28].mxu0 %vm199_vm2, %v684_v26 }
 0x447   :  { %3018 = vmatprep.mubr.msk.bf16.mxu0 %vm3362_vm0, %v3361_v0  ;;  %3009 = vmatpush3.bf16.msra.mxu1 %v3212_v53 }
 0x448   :  { %3022 = vmatprep.subr.bf16.mxu1 %v3361_v0 }
 0x483   :  { %v776_v27 = vpop.f32.mrb[16].mxu0 }
 0x484   :  { %v728_v30 = vpop.f32.mrb[20].mxu1  ;;  %v2968_v31 = vpop.f32.mrb[17].mxu0 }
 0x485   :  { %v2962_v34 = vpop.f32.mrb[21].mxu1  ;;  %v779_v35 = vpop.f32.mrb[18].mxu0 }
 0x486   :  { %v731_v37 = vpop.f32.mrb[22].mxu1  ;;  %v2969_v39 = vpop.f32.mrb[19].mxu0 }
 0x487   :  { %v2963_v32 = vpop.f32.mrb[23].mxu1 }
 0x4d8   :  { %v824_v28 = vpop.f32.mrb[24].mxu1 }
 0x4d9   :  { %v2974_v40 = vpop.f32.mrb[25].mxu1 }
 0x4da   :  { %v827_v38 = vpop.f32.mrb[26].mxu1 }
 0x4db   :  { %v2975_v41 = vpop.f32.mrb[27].mxu1 }
 0x4dc   :  { %v872_v42 = vpop.f32.mrb[20].mxu0 }
 0x4dd   :  { %v3179_v43 = vpack.i.bf16 %v872_v42, %v824_v28  ;;  %v2980_v44 = vpop.f32.mrb[21].mxu0 }
 0x4de   :  { %v875_v45 = vpop.f32.mrb[22].mxu0 }
 0x4df   :  { %v2981_v46 = vpop.f32.mrb[23].mxu0  ;;  %3180 = vrot.lane.b32.xlu0 %v3179_v43, %s3359_s29 }
 0x4e0   :  { %v3214_v46 = vld [vmem:[%s4022_s2 + $0x28] sm:$0xff]  }
 0x50d   :  { %v920_v48 = vpop.f32.mrb[28].mxu1 }
 0x50e   :  { %v2986_v49 = vpop.f32.mrb[29].mxu1 }
 0x50f   :  { %v923_v50 = vpop.f32.mrb[30].mxu1 }
 0x510   :  { %v2987_v51 = vpop.f32.mrb[31].mxu1 }
 0x511   :  { %v968_v52 = vpop.f32.mrb[24].mxu0 }
 0x512   :  { %v3184_v54 = vpack.i.bf16 %v968_v52, %v920_v48  ;;  %v2992_v55 = vpop.f32.mrb[25].mxu0  ;;  %v3216_v48 = vld [vmem:[%s4023_s3 + $0x8] sm:$0xff]  }
 0x513   :  { %v971_v56 = vpop.f32.mrb[26].mxu0  ;;  %v1194_v55 = vsub.s32 2, %v3455_v11 }
 0x514   :  { %v2993_v57 = vpop.f32.mrb[27].mxu0  ;;  %3185 = vrot.lane.b32.xlu1 %v3184_v54, %s3368_s9 }
 0x515   :  { %v1016_v58 = vpop.f32.mrb[32].mxu1  ;;  %v1195_v56 = vrot.slane %v3460_v13, %v1194_v55  ;;  %v1200_v57 = vsub.s32 3, %v3455_v11 }
 0x516   :  { %v2998_v36 = vpop.f32.mrb[33].mxu1 }
 0x517   :  { %v1019_v59 = vpop.f32.mrb[34].mxu1 }
 0x518   :  { %v2999_v60 = vpop.f32.mrb[35].mxu1 }
 0x519   :  { %v1064_v61 = vpop.f32.mrb[28].mxu0 }
 0x51a   :  { %v3189_v62 = vpack.i.bf16 %v1064_v61, %v1016_v58  ;;  %v3004_v63 = vpop.f32.mrb[29].mxu0 }
 0x51b   :  { %v1067_v1 = vpop.f32.mrb[30].mxu0 }
 0x51c   :  { %v3005_v33 = vpop.f32.mrb[31].mxu0  ;;  %3190 = vrot.lane.b32.xlu0 %v3189_v62, %s3369_s10  ;;  %v1201_v62 = vrot.slane %v3460_v13, %v1200_v57 }
 0x551   :  { %v3181_v2 = vpop.permute.xlu0 %3180 }
 0x552   :  { %v3183_v25 = vunpack.i.h.bf16 %v3181_v2  ;;  %v3182_v29 = vunpack.i.l.bf16 %v3181_v2 }
 0x554   :  { %v1095_v10 = vsel %vm199_vm2, %v776_v27, %v3183_v25  ;;  %v1094_v9 = vsel %vm199_vm2, %v728_v30, %v3182_v29  ;;  %v3218_v25 = vld [vmem:[%s4023_s3 + $0x18] sm:$0xff]   ;;  %v1207_v29 = vsub.s32 4, %v3455_v11 }
 0x586   :  { %v3186_v3 = vpop.permute.xlu1 %3185 }
 0x587   :  { %v3188_v4 = vunpack.i.h.bf16 %v3186_v3  ;;  %v3187_v5 = vunpack.i.l.bf16 %v3186_v3  ;;  %v3217_v3 = vld [vmem:[%s4023_s3 + $0x10] sm:$0xff]  }
 0x589   :  { %v1098_v15 = vsel %vm1096_vm4, %v1095_v10, %v3188_v4  ;;  %v1097_v16 = vsel %vm1096_vm4, %v1094_v9, %v3187_v5  ;;  %v1208_v4 = vrot.slane %v3460_v13, %v1207_v29 }
 0x58e   :  { %v3191_v22 = vpop.permute.xlu0 %3190 }
 0x58f   :  { %v3193_v6 = vunpack.i.h.bf16 %v3191_v22  ;;  %v3192_v14 = vunpack.i.l.bf16 %v3191_v22 }
 0x591   :  { %v1101_v17 = vsel %vm1099_vm5, %v1098_v15, %v3193_v6  ;;  %v1100_v18 = vsel %vm1099_vm5, %v1097_v16, %v3192_v14 }
 0x592   :  { %v1102_v19 = vpack.c.bf16 %v1101_v17, %v1100_v18  ;;  %v1270_v18 = vsub.s32 5, %v3455_v11 }
 0x594   :  { %3011 = vmatmul.mubr.msk.bf16.vlgmr.msra.gmra.mrb[36].mxu1 %vm107_vm1, %v1102_v19  ;;  %v1271_v19 = vrot.slane %v3460_v13, %v1270_v18 }
 0x595   :  { %3030 = vmatprep.mubr.msk.bf16.mxu1 %vm3362_vm0, %v3361_v0  ;;  %3023 = vmatpush3.bf16.msra.mxu1 %v3215_v47 }
 0x596   :  { %3024 = vmatprep.subr.bf16.mxu1 %v3361_v0 }
 0x599   :  { %3025 = vmatpush3.bf16.msra.mxu1 %v3216_v48 }
 0x59a   :  { %3026 = vmatprep.subr.bf16.mxu1 %v3361_v0 }
 0x59d   :  { %3027 = vmatpush3.bf16.msra.mxu1 %v3217_v3 }
 0x59e   :  { %3028 = vmatprep.subr.bf16.mxu1 %v3361_v0 }
 0x5a1   :  { %3029 = vmatpush3.bf16.msra.mxu1 %v3218_v25 }
 0x5a2   :  { %3048 = vmatprep.subr.bf16.mxu1 %v3361_v0 }
 0x667   :  { %v1156_v23 = vpop.f32.mrb[36].mxu1 }
 0x668   :  { %v1157_v24 = vadd.f32 %v1156_v23, %v1106_v21  ;;  %v3012_v26 = vpop.f32.mrb[37].mxu1 }
 0x669   :  { %v1159_v27 = vpop.f32.mrb[38].mxu1 }
 0x66a   :  { %v1160_v30 = vadd.f32 %v1159_v27, %v1106_v21  ;;  %v3013_v31 = vpop.f32.mrb[39].mxu1  ;;  %v1163_v34 = vadd.f32 %v1157_v24, %v3445_v7 }
 0x66c   :  { %v1165_v35 = vsel %vm107_vm1, %v1163_v34, 0.0  ;;  %v1164_v37 = vadd.f32 %v1160_v30, %v3447_v8  ;;  %v3213_v8 = vld [vmem:[%s4022_s2 + $0x20] sm:$0xff]  }
 0x66d   :  { %1166 = vadd.xlane.f32.xlu1 %v1165_v35  ;;  %3015 = vmatpush3.bf16.msra.mxu0 %v3213_v8  ;;  %v3220_v8 = vld [vmem:[%s4022_s2 + $0x38] sm:$0xff]  }
 0x66e   :  { %v1168_v39 = vsel %vm107_vm1, %v1164_v37, 0.0  ;;  %3016 = vmatprep.subr.bf16.mxu0 %v3361_v0 }
 0x66f   :  { %1169 = vadd.xlane.f32.xlu0 %v1168_v39 }
 0x671   :  { %3017 = vmatpush3.bf16.msra.mxu0 %v3214_v46 }
 0x672   :  { %3034 = vmatprep.subr.bf16.mxu0 %v3361_v0 }
 0x6fa   :  { %v1167_v32 = vpop.xlane.xlu1 %1166 }
 0x6fb   :  { %v1172_v28 = vmul.f32 0.03125, %v1167_v32 }
 0x6fc   :  { %v1170_v40 = vpop.xlane.xlu0 %1169 }
 0x6fd   :  { %v1174_v38 = vsub.f32 %v1163_v34, %v1172_v28  ;;  %v1173_v41 = vmul.f32 0.03125, %v1170_v40 }
 0x6ff   :  { %v1175_v42 = vsub.f32 %v1164_v37, %v1173_v41  ;;  %v1176_v43 = vmul.f32 %v1174_v38, %v1174_v38 }
 0x701   :  { %v1178_v44 = vsel %vm107_vm1, %v1176_v43, 0.0  ;;  %v1177_v45 = vmul.f32 %v1175_v42, %v1175_v42 }
 0x702   :  { %1179 = vadd.xlane.f32.xlu0 %v1178_v44 }
 0x703   :  { %v1181_v7 = vsel %vm107_vm1, %v1177_v45, 0.0 }
 0x704   :  { %1182 = vadd.xlane.f32.xlu1 %v1181_v7  ;;  %v3219_v7 = vld [vmem:[%s4022_s2 + $0x30] sm:$0xff]  }
 0x78f   :  { %v1180_v49 = vpop.xlane.xlu0 %1179 }
 0x790   :  { %v1184_v50 = vmul.f32 0.03125, %v1180_v49 }
 0x791   :  { %v1183_v51 = vpop.xlane.xlu1 %1182 }
 0x792   :  { %v1186_v52 = vadd.f32 1e-05, %v1184_v50  ;;  %v1185_v53 = vmul.f32 0.03125, %v1183_v51 }
 0x794   :  { %3261 = vrsqrt.f32 %v1186_v52  ;;  %v1187_v54 = vadd.f32 1e-05, %v1185_v53  ;;  %v1371_v52 = vsub.s32 6, %v3455_v11 }
 0x796   :  { %3263 = vrsqrt.f32 %v1187_v54  ;;  %v1372_v53 = vrot.slane %v3460_v13, %v1371_v52  ;;  %v1377_v54 = vsub.s32 7, %v3455_v11 }
 0x79e   :  { %v3262_v58 = vpop.eup %3261 }
 0x79f   :  { %v1190_v36 = vmul.f32 %v3262_v58, %v1174_v38 }
 0x7a0   :  { %v3264_v59 = vpop.eup %3263 }
 0x7a1   :  { %v1196_v60 = vmul.f32 %v1195_v56, %v1190_v36  ;;  %v1191_v61 = vmul.f32 %v3264_v59, %v1175_v42 }
 0x7a3   :  { %v1197_v63 = vmul.f32 %v1195_v56, %v1191_v61  ;;  %v1202_v1 = vadd.f32 %v1201_v62, %v1196_v60  ;;  %v1378_v61 = vrot.slane %v3460_v13, %v1377_v54 }
 0x7a5   :  { %v1203_v33 = vadd.f32 %v1201_v62, %v1197_v63 }
 0x7a7   :  { %v1204_v2 = vpack.c.bf16 %v1203_v33, %v1202_v1 }
 0x7a9   :  { %3019 = vmatmul.mubr.msk.bf16.vlgmr.msra.gmra.mrb[32].mxu0 %vm107_vm1, %v1204_v2  ;;  %v3753_v2 = vld [vmem:[#allocation4 + $0x8] sm:$0xff] }
 0x7aa   :  { %3038 = vmatprep.mubr.msk.bf16.mxu0 %vm3362_vm0, %v3361_v0  ;;  %3035 = vmatpush3.bf16.msra.mxu0 %v3219_v7  ;;  %v1411_v3 = vrot.slane %v3753_v2, %v3458_v12 }
 0x7ab   :  { %3036 = vmatprep.subr.bf16.mxu0 %v3361_v0 }
 0x7ae   :  { %3037 = vmatpush3.bf16.msra.mxu0 %v3220_v8 }
 0x7af   :  { %3042 = vmatprep.subr.bf16.mxu0 %v3361_v0 }
 0x87c   :  { %v1258_v5 = vpop.f32.mrb[32].mxu0 }
 0x87d   :  { %v1259_v22 = vadd.f32 %v1258_v5, %v1208_v4  ;;  %v3020_v10 = vpop.f32.mrb[33].mxu0 }
 0x87e   :  { %v1261_v9 = vpop.f32.mrb[34].mxu0 }
 0x87f   :  { %v1262_v6 = vadd.f32 %v1261_v9, %v1208_v4  ;;  %v3021_v14 = vpop.f32.mrb[35].mxu0  ;;  %v1265_v15 = vmax.f32 %v1259_v22, 0.0 }
 0x881   :  { %v1266_v16 = vmax.f32 %v1262_v6, 0.0 }
 0x883   :  { %v1267_v17 = vpack.c.bf16 %v1266_v16, %v1265_v15 }
 0x885   :  { %3031 = vmatmul.mubr.msk.bf16.vlgmr.msra.gmra.mrb[40].mxu1 %vm1296_vm6, %v1267_v17 }
 0x886   :  { %3050 = vmatprep.mubr.msk.bf16.mxu1 %vm3362_vm0, %v3361_v0 }
 0x958   :  { %v1334_v21 = vpop.f32.mrb[40].mxu1 }
 0x959   :  { %v1335_v23 = vadd.f32 %v1334_v21, %v1271_v19  ;;  %v3032_v24 = vpop.f32.mrb[41].mxu1 }
 0x95a   :  { %v1337_v26 = vpop.f32.mrb[42].mxu1 }
 0x95b   :  { %v1338_v27 = vadd.f32 %v1337_v26, %v1271_v19  ;;  %v3033_v30 = vpop.f32.mrb[43].mxu1  ;;  %v1341_v31 = vadd.f32 %v1335_v23, %v1202_v1 }
 0x95d   :  { %v1343_v34 = vsel %vm107_vm1, %v1341_v31, 0.0  ;;  %v1342_v35 = vadd.f32 %v1338_v27, %v1203_v33 }
 0x95e   :  { %1344 = vadd.xlane.f32.xlu0 %v1343_v34 }
 0x95f   :  { %v1346_v37 = vsel %vm107_vm1, %v1342_v35, 0.0 }
 0x960   :  { %1347 = vadd.xlane.f32.xlu1 %v1346_v37 }
 0x9eb   :  { %v1345_v39 = vpop.xlane.xlu0 %1344 }
 0x9ec   :  { %v1349_v32 = vmul.f32 0.03125, %v1345_v39 }
 0x9ed   :  { %v1348_v28 = vpop.xlane.xlu1 %1347 }
 0x9ee   :  { %v1351_v40 = vsub.f32 %v1341_v31, %v1349_v32  ;;  %v1350_v38 = vmul.f32 0.03125, %v1348_v28 }
 0x9f0   :  { %v1352_v41 = vsub.f32 %v1342_v35, %v1350_v38  ;;  %v1353_v42 = vmul.f32 %v1351_v40, %v1351_v40 }
 0x9f2   :  { %v1355_v43 = vsel %vm107_vm1, %v1353_v42, 0.0  ;;  %v1354_v44 = vmul.f32 %v1352_v41, %v1352_v41 }
 0x9f3   :  { %1356 = vadd.xlane.f32.xlu0 %v1355_v43 }
 0x9f4   :  { %v1358_v45 = vsel %vm107_vm1, %v1354_v44, 0.0 }
 0x9f5   :  { %1359 = vadd.xlane.f32.xlu1 %v1358_v45 }
 0xa80   :  { %v1357_v46 = vpop.xlane.xlu0 %1356 }
 0xa81   :  { %v1361_v47 = vmul.f32 0.03125, %v1357_v46 }
 0xa82   :  { %v1360_v48 = vpop.xlane.xlu1 %1359 }
 0xa83   :  { %v1363_v49 = vadd.f32 1e-05, %v1361_v47  ;;  %v1362_v50 = vmul.f32 0.03125, %v1360_v48 }
 0xa85   :  { %3265 = vrsqrt.f32 %v1363_v49  ;;  %v1364_v51 = vadd.f32 1e-05, %v1362_v50 }
 0xa87   :  { %3267 = vrsqrt.f32 %v1364_v51 }
 0xa8f   :  { %v3266_v56 = vpop.eup %3265 }
 0xa90   :  { %v1367_v58 = vmul.f32 %v3266_v56, %v1351_v40 }
 0xa91   :  { %v3268_v36 = vpop.eup %3267 }
 0xa92   :  { %v1373_v59 = vmul.f32 %v1372_v53, %v1367_v58  ;;  %v1368_v60 = vmul.f32 %v3268_v36, %v1352_v41 }
 0xa94   :  { %v1374_v62 = vmul.f32 %v1372_v53, %v1368_v60  ;;  %v3744_v63 = vadd.f32 %v1378_v61, %v1373_v59 }
 0xa96   :  { %v3746_v1 = vadd.f32 %v1378_v61, %v1374_v62 }
 0xa98   :  { %v1407_v33 = vpack.c.bf16 %v3746_v1, %v3744_v63 }
 0xa9a   :  { %3039 = vmatmul.mubr.msk.bf16.vlgmr.msra.gmra.mrb[36].mxu0 %vm107_vm1, %v1407_v33 }
 0xa9b   :  { %3044 = vmatprep.mubr.msk.bf16.mxu0 %vm3362_vm0, %v3361_v0 }
 0xb6d   :  { %v1461_v25 = vpop.f32.mrb[36].mxu0 }
 0xb6e   :  { %v1462_v13 = vadd.f32 %v1461_v25, %v1411_v3  ;;  %v3040_v4 = vpop.f32.mrb[37].mxu0 }
 0xb6f   :  { %v1464_v5 = vpop.f32.mrb[38].mxu0 }
 0xb70   :  { %v1465_v22 = vadd.f32 %v1464_v5, %v1411_v3  ;;  %1470 = vrot.lane.b32.xlu0 %v1462_v13, %s3364_s25  ;;  %v3041_v10 = vpop.f32.mrb[39].mxu0  ;;  %v1504_v6 = vpack.c.bf16 %v1462_v13, %v1462_v13  ;;  %v1488_v28 = vmul.f32 0.35355338, %v1462_v13 }
 0xb72   :  { %1472 = vrot.lane.b32.xlu1 %v1465_v22, %s3364_s25  ;;  %v1505_v9 = vpack.c.bf16 %v1465_v22, %v1465_v22  ;;  %v1489_v32 = vmul.f32 0.35355338, %v1465_v22  ;;  %v1496_v38 = vpack.c.bf16 %v1488_v28, %v1488_v28 }
 0xb74   :  { %1478 = vrot.lane.b32.xlu0 %v1465_v22, %s3363_s1  ;;  %v1497_v40 = vpack.c.bf16 %v1489_v32, %v1489_v32 }
 0xb76   :  { %1476 = vrot.lane.b32.xlu1 %v1462_v13, %s3363_s1 }
 0xb78   :  { %1484 = vrot.lane.b32.xlu0 %v1465_v22, %s3365_s26 }
 0xb7a   :  { %1482 = vrot.lane.b32.xlu1 %v1462_v13, %s3365_s26 }
 0xb7c   :  { %1562 = vrot.lane.b32.xlu0 %v1505_v9, %s3366_s27 }
 0xb7e   :  { %1513 = vrot.lane.b32.xlu1 %v1504_v6, %s3366_s27 }
 0xbe2   :  { %v1471_v14 = vpop.permute.xlu0 %1470 }
 0xbe3   :  { %v3765_v15 = vpack.c.bf16 %v1471_v14, %v1471_v14  ;;  %v1490_v44 = vmul.f32 0.35355338, %v1471_v14 }
 0xbe4   :  { %v1473_v16 = vpop.permute.xlu1 %1472 }
 0xbe5   :  { %v3767_v17 = vpack.c.bf16 %v1473_v16, %v1473_v16  ;;  %1611 = vrot.lane.b32.xlu1 %v3765_v15, %s3366_s27  ;;  %v1491_v7 = vmul.f32 0.35355338, %v1473_v16  ;;  %v1498_v46 = vpack.c.bf16 %v1490_v44, %v1490_v44 }
 0xbe6   :  { %v1479_v19 = vpop.permute.xlu0 %1478 }
 0xbe7   :  { %1660 = vrot.lane.b32.xlu0 %v3767_v17, %s3366_s27  ;;  %v3773_v23 = vpack.c.bf16 %v1479_v19, %v1479_v19  ;;  %v1499_v48 = vpack.c.bf16 %v1491_v7, %v1491_v7  ;;  %v1493_v53 = vmul.f32 0.35355338, %v1479_v19 }
 0xbe8   :  { %v1477_v21 = vpop.permute.xlu1 %1476 }
 0xbe9   :  { %v3775_v24 = vpack.c.bf16 %v1477_v21, %v1477_v21  ;;  %v1492_v50 = vmul.f32 0.35355338, %v1477_v21  ;;  %v1501_v59 = vpack.c.bf16 %v1493_v53, %v1493_v53 }
 0xbea   :  { %v3777_v26 = vpop.permute.xlu0 %1484 }
 0xbeb   :  { %1709 = vrot.lane.b32.xlu1 %v3775_v24, %s3366_s27  ;;  %1758 = vrot.lane.b32.xlu0 %v3773_v23, %s3366_s27  ;;  %v3785_v30 = vpack.c.bf16 %v3777_v26, %v3777_v26  ;;  %v1500_v58 = vpack.c.bf16 %v1492_v50, %v1492_v50  ;;  %v1495_v33 = vmul.f32 0.35355338, %v3777_v26 }
 0xbec   :  { %v1483_v27 = vpop.permute.xlu1 %1482 }
 0xbed   :  { %v3787_v31 = vpack.c.bf16 %v1483_v27, %v1483_v27  ;;  %v1494_v61 = vmul.f32 0.35355338, %v1483_v27  ;;  %v1503_v4 = vpack.c.bf16 %v1495_v33, %v1495_v33 }
 0xbee   :  { %v1563_v34 = vpop.permute.xlu0 %1562 }
 0xbef   :  { %v1568_v35 = vsel %vm199_vm2, %v1563_v34, 0  ;;  %1807 = vrot.lane.b32.xlu1 %v3787_v31, %s3366_s27  ;;  %1856 = vrot.lane.b32.xlu0 %v3785_v30, %s3366_s27  ;;  %v1502_v25 = vpack.c.bf16 %v1494_v61, %v1494_v61 }
 0xbf0   :  { %v1514_v37 = vpop.permute.xlu1 %1513  ;;  %3049 = vmatpush3.bf16.xpose.msra.mxu1 %v1568_v35 }
 0xbf1   :  { %v1519_v39 = vsel %vm199_vm2, %v1514_v37, 0  ;;  %3060 = vmatprep.subr.bf16.mxu1 %v3361_v0 }
 0xbf2   :  { %3043 = vmatpush3.bf16.xpose.msra.mxu0 %v1519_v39 }
 0xbf3   :  { %2048 = vrot.lane.b32.xlu1 %v1505_v9, %s3367_s28  ;;  %2000 = vrot.lane.b32.xlu0 %v1504_v6, %s3367_s28 }
 0xbf4   :  { %3054 = vmatprep.subr.bf16.mxu0 %v3361_v0 }
 0xbf7   :  { %3051 = vmatmul.mubr.msk.bf16.vlgmr.msra.gmra.mrb[44].mxu1 %vm199_vm2, %v1497_v40 }
 0xbf8   :  { %3062 = vmatprep.mubr.msk.bf16.mxu1 %vm3362_vm0, %v3361_v0 }
 0xbf9   :  { %3045 = vmatmul.mubr.msk.bf16.vlgmr.msra.gmra.mrb[40].mxu0 %vm199_vm2, %v1496_v38 }
 0xbfa   :  { %3056 = vmatprep.mubr.msk.bf16.mxu0 %vm3362_vm0, %v3361_v0 }
 0xc57   :  { %v1612_v41 = vpop.permute.xlu1 %1611 }
 0xc58   :  { %v1617_v42 = vsel %vm199_vm2, %v1612_v41, 0 }
 0xc59   :  { %3055 = vmatpush3.bf16.xpose.msra.mxu0 %v1617_v42  ;;  %v1661_v43 = vpop.permute.xlu0 %1660 }
 0xc5a   :  { %v1666_v45 = vsel %vm199_vm2, %v1661_v43, 0  ;;  %3066 = vmatprep.subr.bf16.mxu0 %v3361_v0 }
 0xc5b   :  { %3061 = vmatpush3.bf16.xpose.msra.mxu1 %v1666_v45 }
 0xc5c   :  { %3072 = vmatprep.subr.bf16.mxu1 %v3361_v0 }
 0xc5d   :  { %v1710_v8 = vpop.permute.xlu1 %1709  ;;  %v1759_v47 = vpop.permute.xlu0 %1758 }
 0xc5e   :  { %v1715_v49 = vsel %vm199_vm2, %v1710_v8, 0  ;;  %v1764_v51 = vsel %vm199_vm2, %v1759_v47, 0 }
 0xc60   :  { %3057 = vmatmul.mubr.msk.bf16.vlgmr.msra.gmra.mrb[44].mxu0 %vm199_vm2, %v1498_v46 }
 0xc61   :  { %3067 = vmatpush3.bf16.xpose.msra.mxu0 %v1715_v49  ;;  %3068 = vmatprep.mubr.msk.bf16.mxu0 %vm3362_vm0, %v3361_v0  ;;  %v1808_v56 = vpop.permute.xlu1 %1807  ;;  %v1857_v36 = vpop.permute.xlu0 %1856 }
 0xc62   :  { %3063 = vmatmul.mubr.msk.bf16.vlgmr.msra.gmra.mrb[48].mxu1 %vm199_vm2, %v1499_v48  ;;  %3078 = vmatprep.subr.bf16.mxu0 %v3361_v0  ;;  %v1813_v60 = vsel %vm199_vm2, %v1808_v56, 0  ;;  %v1862_v62 = vsel %vm199_vm2, %v1857_v36, 0 }
 0xc63   :  { %3073 = vmatpush3.bf16.xpose.msra.mxu1 %v1764_v51  ;;  %3074 = vmatprep.mubr.msk.bf16.mxu1 %vm3362_vm0, %v3361_v0 }
 0xc64   :  { %3084 = vmatprep.subr.bf16.mxu1 %v3361_v0 }
 0xc65   :  { %v2001_v3 = vpop.permute.xlu0 %2000  ;;  %v2049_v13 = vpop.permute.xlu1 %2048 }
 0xc66   :  { %v2006_v5 = vsel %vm690_vm3, %v2001_v3, 0  ;;  %v2054_v22 = vsel %vm690_vm3, %v2049_v13, 0 }
 0xc68   :  { %3069 = vmatmul.mubr.msk.bf16.vlgmr.msra.gmra.mrb[48].mxu0 %vm199_vm2, %v1500_v58 }
 0xc69   :  { %3079 = vmatpush3.bf16.xpose.msra.mxu0 %v1813_v60  ;;  %3080 = vmatprep.mubr.msk.bf16.mxu0 %vm3362_vm0, %v3361_v0 }
 0xc6a   :  { %3075 = vmatmul.mubr.msk.bf16.vlgmr.msra.gmra.mrb[52].mxu1 %vm199_vm2, %v1501_v59  ;;  %3090 = vmatprep.subr.bf16.mxu0 %v3361_v0 }
 0xc6b   :  { %3085 = vmatpush3.bf16.xpose.msra.mxu1 %v1862_v62  ;;  %3086 = vmatprep.mubr.msk.bf16.mxu1 %vm3362_vm0, %v3361_v0 }
 0xc6c   :  { %3096 = vmatprep.subr.bf16.mxu1 %v3361_v0 }
 0xc70   :  { %3081 = vmatmul.mubr.msk.bf16.vlgmr.msra.gmra.mrb[52].mxu0 %vm199_vm2, %v1502_v25 }
 0xc71   :  { %3091 = vmatpush3.bf16.msra.mxu0 %v2006_v5  ;;  %3092 = vmatprep.mubr.msk.bf16.mxu0 %vm3362_vm0, %v3361_v0 }
 0xc72   :  { %3087 = vmatmul.mubr.msk.bf16.vlgmr.msra.gmra.mrb[56].mxu1 %vm199_vm2, %v1503_v4  ;;  %3102 = vmatprep.subr.bf16.mxu0 %v3361_v0 }
 0xc73   :  { %3097 = vmatpush3.bf16.msra.mxu1 %v2054_v22  ;;  %3098 = vmatprep.mubr.msk.bf16.mxu1 %vm3362_vm0, %v3361_v0 }
 0xc74   :  { %3108 = vmatprep.subr.bf16.mxu1 %v3361_v0 }
 0xcca   :  { %v1604_v10 = vpop.f32.mrb[44].mxu1 }
 0xccb   :  { %v3052_v9 = vpop.f32.mrb[45].mxu1  ;;  %v1907_v6 = vsel %vm199_vm2, %v1604_v10, -inf }
 0xccc   :  { %v1555_v14 = vpop.f32.mrb[40].mxu0  ;;  %1908 = vmax.xlane.f32.xlu0 %v1907_v6  ;;  %v1607_v16 = vpop.f32.mrb[46].mxu1 }
 0xccd   :  { %v3046_v19 = vpop.f32.mrb[41].mxu0  ;;  %v3053_v21 = vpop.f32.mrb[47].mxu1  ;;  %v1904_v26 = vsel %vm199_vm2, %v1555_v14, -inf }
 0xcce   :  { %1905 = vmax.xlane.f32.xlu1 %v1904_v26  ;;  %v1558_v27 = vpop.f32.mrb[42].mxu0 }
 0xccf   :  { %v3047_v34 = vpop.f32.mrb[43].mxu0 }
 0xd33   :  { %v1653_v35 = vpop.f32.mrb[44].mxu0 }
 0xd34   :  { %v3058_v37 = vpop.f32.mrb[45].mxu0  ;;  %v1910_v39 = vsel %vm199_vm2, %v1653_v35, -inf }
 0xd35   :  { %v1656_v32 = vpop.f32.mrb[46].mxu0  ;;  %1911 = vmax.xlane.f32.xlu0 %v1910_v39  ;;  %v1702_v28 = vpop.f32.mrb[48].mxu1 }
 0xd36   :  { %v3059_v40 = vpop.f32.mrb[47].mxu0  ;;  %v3064_v38 = vpop.f32.mrb[49].mxu1  ;;  %v1913_v41 = vsel %vm199_vm2, %v1702_v28, -inf }
 0xd37   :  { %1914 = vmax.xlane.f32.xlu1 %v1913_v41  ;;  %v1705_v42 = vpop.f32.mrb[50].mxu1 }
 0xd38   :  { %v3065_v43 = vpop.f32.mrb[51].mxu1 }
 0xd3b   :  { %v3844_v44 = vpop.f32.mrb[48].mxu0 }
 0xd3c   :  { %v3070_v45 = vpop.f32.mrb[49].mxu0  ;;  %v1916_v7 = vsel %vm199_vm2, %v3844_v44, -inf }
 0xd3d   :  { %v1754_v8 = vpop.f32.mrb[50].mxu0  ;;  %1917 = vmax.xlane.f32.xlu0 %v1916_v7  ;;  %v1800_v46 = vpop.f32.mrb[52].mxu1 }
 0xd3e   :  { %v3071_v47 = vpop.f32.mrb[51].mxu0  ;;  %v3076_v48 = vpop.f32.mrb[53].mxu1  ;;  %v1919_v49 = vsel %vm199_vm2, %v1800_v46, -inf }
 0xd3f   :  { %1920 = vmax.xlane.f32.xlu1 %v1919_v49  ;;  %v1803_v50 = vpop.f32.mrb[54].mxu1 }
 0xd40   :  { %v3077_v51 = vpop.f32.mrb[55].mxu1 }
 0xd43   :  { %v3849_v53 = vpop.f32.mrb[52].mxu0 }
 0xd44   :  { %v3082_v56 = vpop.f32.mrb[53].mxu0  ;;  %v1922_v58 = vsel %vm199_vm2, %v3849_v53, -inf }
 0xd45   :  { %v1852_v36 = vpop.f32.mrb[54].mxu0  ;;  %1923 = vmax.xlane.f32.xlu0 %v1922_v58  ;;  %v1898_v59 = vpop.f32.mrb[56].mxu1 }
 0xd46   :  { %v3083_v60 = vpop.f32.mrb[55].mxu0  ;;  %v3088_v61 = vpop.f32.mrb[57].mxu1  ;;  %v1925_v62 = vsel %vm199_vm2, %v1898_v59, -inf }
 0xd47   :  { %1926 = vmax.xlane.f32.xlu1 %v1925_v62  ;;  %v1901_v33 = vpop.f32.mrb[58].mxu1 }
 0xd48   :  { %v3089_v3 = vpop.f32.mrb[59].mxu1 }
 0xd58   :  { %2096 = vrot.lane.b32.xlu1 %v3765_v15, %s3367_s28 }
 0xd59   :  { %v1909_v13 = vpop.xlane.xlu0 %1908 }
 0xd5a   :  { %v1929_v5 = vsub.f32 %v1604_v10, %v1909_v13 }
 0xd5b   :  { %2144 = vrot.lane.b32.xlu0 %v3767_v17, %s3367_s28  ;;  %v1906_v25 = vpop.xlane.xlu1 %1905 }
 0xd5c   :  { %v1928_v4 = vsub.f32 %v1555_v14, %v1906_v25  ;;  %v1938_v9 = vmul.f32 1.442695, %v1929_v5 }
 0xd5e   :  { %v1936_v22 = vmul.f32 1.442695, %v1928_v4 }
 0xd60   :  { %3269 = vpow2.f32 %v1936_v22 }
 0xd61   :  { %3271 = vpow2.f32 %v1938_v9 }
 0xd6a   :  { %v3270_v6 = vpop.eup %3269 }
 0xd6b   :  { %v3272_v16 = vpop.eup %3271  ;;  %v1952_v19 = vsel %vm199_vm2, %v3270_v6, 0.0 }
 0xd6c   :  { %v1955_v21 = vsel %vm199_vm2, %v3272_v16, 0.0 }
 0xd7a   :  { %1953 = vadd.xlane.f32.xlu0 %v1952_v19 }
 0xd7c   :  { %1956 = vadd.xlane.f32.xlu1 %v1955_v21 }
 0xd8d   :  { %2192 = vrot.lane.b32.xlu1 %v3775_v24, %s3367_s28 }
 0xdc2   :  { %v1912_v15 = vpop.xlane.xlu0 %1911 }
 0xdc3   :  { %v1930_v17 = vsub.f32 %v1653_v35, %v1912_v15 }
 0xdc4   :  { %v1915_v26 = vpop.xlane.xlu1 %1914 }
 0xdc5   :  { %v1940_v14 = vmul.f32 1.442695, %v1930_v17  ;;  %v1931_v10 = vsub.f32 %v1702_v28, %v1915_v26 }
 0xdc7   :  { %3273 = vpow2.f32 %v1940_v14  ;;  %v1942_v27 = vmul.f32 1.442695, %v1931_v10 }
 0xdc9   :  { %3275 = vpow2.f32 %v1942_v27 }
 0xdca   :  { %v1918_v8 = vpop.xlane.xlu0 %1917 }
 0xdcc   :  { %v1921_v34 = vpop.xlane.xlu1 %1920 }
 0xdcd   :  { %v1933_v37 = vsub.f32 %v1800_v46, %v1921_v34  ;;  %v1932_v46 = vsub.f32 %v3844_v44, %v1918_v8 }
 0xdcf   :  { %v1946_v39 = vmul.f32 1.442695, %v1933_v37  ;;  %v1944_v48 = vmul.f32 1.442695, %v1932_v46 }
 0xdd1   :  { %v3862_v32 = vpop.eup %3273  ;;  %3277 = vpow2.f32 %v1946_v39 }
 0xdd2   :  { %v1958_v40 = vsel %vm199_vm2, %v3862_v32, 0.0  ;;  %v1924_v47 = vpop.xlane.xlu0 %1923 }
 0xdd3   :  { %v3866_v38 = vpop.eup %3275  ;;  %1959 = vadd.xlane.f32.xlu0 %v1958_v40  ;;  %v1934_v49 = vsub.f32 %v3849_v53, %v1924_v47 }
 0xdd4   :  { %v1927_v24 = vpop.xlane.xlu1 %1926  ;;  %v1961_v35 = vsel %vm199_vm2, %v3866_v38, 0.0 }
 0xdd5   :  { %v1935_v28 = vsub.f32 %v1898_v59, %v1927_v24  ;;  %1962 = vadd.xlane.f32.xlu1 %v1961_v35  ;;  %v1948_v50 = vmul.f32 1.442695, %v1934_v49 }
 0xdd6   :  { %v2145_v51 = vpop.permute.xlu0 %2144 }
 0xdd7   :  { %v1950_v41 = vmul.f32 1.442695, %v1935_v28  ;;  %v2150_v13 = vsel %vm690_vm3, %v2145_v51, 0 }
 0xdd8   :  { %v2097_v58 = vpop.permute.xlu1 %2096 }
 0xdd9   :  { %3279 = vpow2.f32 %v1950_v41  ;;  %v2102_v3 = vsel %vm690_vm3, %v2097_v58, 0 }
 0xdda   :  { %3281 = vpow2.f32 %v1944_v48 }
 0xddb   :  { %v3870_v42 = vpop.eup %3277  ;;  %3283 = vpow2.f32 %v1948_v50 }
 0xddc   :  { %v1967_v43 = vsel %vm199_vm2, %v3870_v42, 0.0 }
 0xddd   :  { %1968 = vadd.xlane.f32.xlu1 %v1967_v43 }
 0xde3   :  { %v3874_v45 = vpop.eup %3279 }
 0xde4   :  { %v1973_v7 = vsel %vm199_vm2, %v3874_v45, 0.0  ;;  %v3884_v56 = vpop.eup %3281 }
 0xde5   :  { %1974 = vadd.xlane.f32.xlu1 %v1973_v7  ;;  %v3888_v59 = vpop.eup %3283 }
 0xde9   :  { %2240 = vrot.lane.b32.xlu0 %v3773_v23, %s3367_s28  ;;  %v1964_v23 = vsel %vm199_vm2, %v3884_v56, 0.0 }
 0xdf6   :  { %2288 = vrot.lane.b32.xlu1 %v3787_v31, %s3367_s28  ;;  %v1970_v31 = vsel %vm199_vm2, %v3888_v59, 0.0 }
 0xe07   :  { %v1954_v36 = vpop.xlane.xlu0 %1953 }
 0xe08   :  { %3285 = vrcp.f32 %v1954_v36  ;;  %1965 = vadd.xlane.f32.xlu0 %v1964_v23 }
 0xe09   :  { %v1957_v44 = vpop.xlane.xlu1 %1956 }
 0xe0a   :  { %3287 = vrcp.f32 %v1957_v44 }
 0xe0c   :  { %1971 = vadd.xlane.f32.xlu0 %v1970_v31 }
 0xe0d   :  { %v2193_v4 = vpop.permute.xlu1 %2192 }
 0xe0e   :  { %v2198_v26 = vsel %vm690_vm3, %v2193_v4, 0 }
 0xe12   :  { %v3286_v53 = vpop.eup %3285 }
 0xe13   :  { %v1984_v60 = vmul.f32 %v3286_v53, %v3270_v6 }
 0xe14   :  { %v3288_v61 = vpop.eup %3287 }
 0xe15   :  { %v1985_v62 = vmul.f32 %v3288_v61, %v3272_v16  ;;  %v1992_v33 = vpack.c.bf16 %v1984_v60, %v1984_v60 }
 0xe17   :  { %3093 = vmatmul.mubr.msk.bf16.vlgmr.msra.gmra.mrb[56].mxu0 %vm199_vm2, %v1992_v33  ;;  %v1993_v25 = vpack.c.bf16 %v1985_v62, %v1985_v62 }
 0xe18   :  { %3103 = vmatpush3.bf16.msra.mxu0 %v2102_v3  ;;  %3104 = vmatprep.mubr.msk.bf16.mxu0 %vm3362_vm0, %v3361_v0 }
 0xe19   :  { %3099 = vmatmul.mubr.msk.bf16.vlgmr.msra.gmra.mrb[60].mxu1 %vm199_vm2, %v1993_v25  ;;  %3114 = vmatprep.subr.bf16.mxu0 %v3361_v0 }
 0xe1a   :  { %3109 = vmatpush3.bf16.msra.mxu1 %v2150_v13  ;;  %3110 = vmatprep.mubr.msk.bf16.mxu1 %vm3362_vm0, %v3361_v0 }
 0xe1b   :  { %3120 = vmatprep.subr.bf16.mxu1 %v3361_v0 }
 0xe22   :  { %2336 = vrot.lane.b32.xlu0 %v3785_v30, %s3367_s28 }
 0xe60   :  { %v1960_v5 = vpop.xlane.xlu0 %1959 }
 0xe61   :  { %3289 = vrcp.f32 %v1960_v5 }
 0xe62   :  { %v1963_v22 = vpop.xlane.xlu1 %1962 }
 0xe63   :  { %3291 = vrcp.f32 %v1963_v22  ;;  %v3221_v22 = vld [vmem:[%s4022_s2 + $0x40] sm:$0xff]  }
 0xe64   :  { %v2241_v17 = vpop.permute.xlu0 %2240 }
 0xe65   :  { %v2246_v14 = vsel %vm690_vm3, %v2241_v17, 0 }
 0xe6a   :  { %v1969_v9 = vpop.xlane.xlu1 %1968 }
 0xe6b   :  { %v3290_v6 = vpop.eup %3289  ;;  %3293 = vrcp.f32 %v1969_v9 }
 0xe6c   :  { %v1986_v16 = vmul.f32 %v3290_v6, %v3862_v32 }
 0xe6d   :  { %v3292_v19 = vpop.eup %3291 }
 0xe6e   :  { %v1987_v21 = vmul.f32 %v3292_v19, %v3866_v38  ;;  %v1994_v15 = vpack.c.bf16 %v1986_v16, %v1986_v16 }
 0xe70   :  { %3105 = vmatmul.mubr.msk.bf16.vlgmr.msra.gmra.mrb[60].mxu0 %vm199_vm2, %v1994_v15  ;;  %v1995_v30 = vpack.c.bf16 %v1987_v21, %v1987_v21  ;;  %v3222_v15 = vld [vmem:[%s4022_s2 + $0x48] sm:$0xff]  }
 0xe71   :  { %3115 = vmatpush3.bf16.msra.mxu0 %v2198_v26  ;;  %3116 = vmatprep.mubr.msk.bf16.mxu0 %vm3362_vm0, %v3361_v0 }
 0xe72   :  { %3111 = vmatmul.mubr.msk.bf16.vlgmr.msra.gmra.mrb[64].mxu1 %vm199_vm2, %v1995_v30  ;;  %3126 = vmatprep.subr.bf16.mxu0 %v3361_v0  ;;  %v1975_v37 = vpop.xlane.xlu1 %1974 }
 0xe73   :  { %3121 = vmatpush3.bf16.msra.mxu1 %v2246_v14  ;;  %3122 = vmatprep.mubr.msk.bf16.mxu1 %vm3362_vm0, %v3361_v0  ;;  %3295 = vrcp.f32 %v1975_v37 }
 0xe74   :  { %3132 = vmatprep.subr.bf16.mxu1 %v3361_v0 }
 0xe75   :  { %v3294_v10 = vpop.eup %3293 }
 0xe76   :  { %v1989_v27 = vmul.f32 %v3294_v10, %v3870_v42  ;;  %v2289_v43 = vpop.permute.xlu1 %2288 }
 0xe78   :  { %v1997_v34 = vpack.c.bf16 %v1989_v27, %v1989_v27 }
 0xe7a   :  { %3123 = vmatmul.mubr.msk.bf16.vlgmr.msra.gmra.mrb[68].mxu1 %vm199_vm2, %v1997_v34 }
 0xe7b   :  { %3134 = vmatprep.mubr.msk.bf16.mxu1 %vm3362_vm0, %v3361_v0 }
 0xe7d   :  { %v3296_v32 = vpop.eup %3295 }
 0xe7e   :  { %v1991_v38 = vmul.f32 %v3296_v32, %v3874_v45  ;;  %v2294_v45 = vsel %vm690_vm3, %v2289_v43, 0 }
 0xe80   :  { %v1999_v41 = vpack.c.bf16 %v1991_v38, %v1991_v38 }
 0xe95   :  { %v1966_v39 = vpop.xlane.xlu0 %1965 }
 0xe96   :  { %3297 = vrcp.f32 %v1966_v39 }
 0xe99   :  { %v1972_v40 = vpop.xlane.xlu0 %1971 }
 0xe9a   :  { %3299 = vrcp.f32 %v1972_v40 }
 0xe9d   :  { %v2337_v24 = vpop.permute.xlu0 %2336 }
 0xe9e   :  { %v2342_v35 = vsel %vm690_vm3, %v2337_v24, 0 }
 0xe9f   :  { %3133 = vmatpush3.bf16.msra.mxu1 %v2342_v35 }
 0xea0   :  { %v3298_v28 = vpop.eup %3297  ;;  %3146 = vmatprep.subr.bf16.mxu1 %v3361_v0 }
 0xea1   :  { %v1988_v42 = vmul.f32 %v3298_v28, %v3884_v56 }
 0xea2   :  { %3135 = vmatmul.mubr.msk.bf16.vlgmr.msra.gmra.mrb[72].mxu1 %vm199_vm2, %v1999_v41 }
 0xea3   :  { %v1996_v7 = vpack.c.bf16 %v1988_v42, %v1988_v42  ;;  %3150 = vmatprep.mubr.msk.bf16.mxu1 %vm3362_vm0, %v3361_v0 }
 0xea4   :  { %v3300_v8 = vpop.eup %3299 }
 0xea5   :  { %3117 = vmatmul.mubr.msk.bf16.vlgmr.msra.gmra.mrb[64].mxu0 %vm199_vm2, %v1996_v7  ;;  %v1990_v46 = vmul.f32 %v3300_v8, %v3888_v59 }
 0xea6   :  { %3127 = vmatpush3.bf16.msra.mxu0 %v2294_v45  ;;  %3128 = vmatprep.mubr.msk.bf16.mxu0 %vm3362_vm0, %v3361_v0 }
 0xea7   :  { %3138 = vmatprep.subr.bf16.mxu0 %v3361_v0  ;;  %v1998_v47 = vpack.c.bf16 %v1990_v46, %v1990_v46 }
 0xead   :  { %3129 = vmatmul.mubr.msk.bf16.vlgmr.msra.gmra.mrb[68].mxu0 %vm199_vm2, %v1998_v47 }
 0xeae   :  { %3142 = vmatprep.mubr.msk.bf16.mxu0 %vm3362_vm0, %v3361_v0  ;;  %3139 = vmatpush3.bf16.msra.mxu0 %v3221_v22 }
 0xeaf   :  { %3140 = vmatprep.subr.bf16.mxu0 %v3361_v0 }
 0xeb2   :  { %3141 = vmatpush3.bf16.msra.mxu0 %v3222_v15 }
 0xeb3   :  { %3154 = vmatprep.subr.bf16.mxu0 %v3361_v0 }
 0xeea   :  { %v2042_v48 = vpop.f32.mrb[56].mxu0 }
 0xeeb   :  { %v3094_v49 = vpop.f32.mrb[57].mxu0 }
 0xeec   :  { %v2045_v50 = vpop.f32.mrb[58].mxu0  ;;  %v2090_v51 = vpop.f32.mrb[60].mxu1 }
 0xeed   :  { %v3095_v56 = vpop.f32.mrb[59].mxu0  ;;  %v3100_v58 = vpop.f32.mrb[61].mxu1 }
 0xeee   :  { %v2093_v36 = vpop.f32.mrb[62].mxu1 }
 0xeef   :  { %v3101_v23 = vpop.f32.mrb[63].mxu1 }
 0xf43   :  { %v2138_v44 = vpop.f32.mrb[60].mxu0 }
 0xf44   :  { %v3106_v31 = vpop.f32.mrb[61].mxu0 }
 0xf45   :  { %v2141_v53 = vpop.f32.mrb[62].mxu0  ;;  %v2186_v59 = vpop.f32.mrb[64].mxu1 }
 0xf46   :  { %v3194_v60 = vpack.i.bf16 %v2186_v59, %v2138_v44  ;;  %v3107_v61 = vpop.f32.mrb[63].mxu0  ;;  %v3112_v62 = vpop.f32.mrb[65].mxu1 }
 0xf47   :  { %v2189_v33 = vpop.f32.mrb[66].mxu1 }
 0xf48   :  { %3195 = vrot.lane.b32.xlu1 %v3194_v60, %s3359_s29  ;;  %v3113_v3 = vpop.f32.mrb[67].mxu1 }
 0xf4d   :  { %v2282_v25 = vpop.f32.mrb[68].mxu1 }
 0xf4e   :  { %v3124_v13 = vpop.f32.mrb[69].mxu1 }
 0xf4f   :  { %v2285_v4 = vpop.f32.mrb[70].mxu1 }
 0xf50   :  { %v3125_v5 = vpop.f32.mrb[71].mxu1 }
 0xf75   :  { %v2378_v9 = vpop.f32.mrb[72].mxu1 }
 0xf76   :  { %v3136_v6 = vpop.f32.mrb[73].mxu1 }
 0xf77   :  { %v2381_v16 = vpop.f32.mrb[74].mxu1  ;;  %v3225_v6 = vld [vmem:[%s4023_s3 + $0x20] sm:$0xff]  }
 0xf78   :  { %v2234_v19 = vpop.f32.mrb[64].mxu0  ;;  %v3137_v21 = vpop.f32.mrb[75].mxu1  ;;  %v3226_v16 = vld [vmem:[%s4023_s3 + $0x28] sm:$0xff]  }
 0xf79   :  { %v3199_v17 = vpack.i.bf16 %v2282_v25, %v2234_v19  ;;  %v3118_v26 = vpop.f32.mrb[65].mxu0 }
 0xf7a   :  { %v2237_v30 = vpop.f32.mrb[66].mxu0 }
 0xf7b   :  { %v3119_v14 = vpop.f32.mrb[67].mxu0  ;;  %3200 = vrot.lane.b32.xlu0 %v3199_v17, %s3368_s9 }
 0xf80   :  { %v2330_v10 = vpop.f32.mrb[68].mxu0 }
 0xf81   :  { %v3204_v27 = vpack.i.bf16 %v2378_v9, %v2330_v10  ;;  %v3130_v34 = vpop.f32.mrb[69].mxu0  ;;  %v3224_v9 = vld [vmem:[%s4022_s2 + $0x58] sm:$0xff]   ;;  %v2506_v10 = vrot.slane %v3753_v2, %v1194_v55 }
 0xf82   :  { %v2333_v37 = vpop.f32.mrb[70].mxu0  ;;  %v3228_v55 = vld [vmem:[%s4023_s3 + $0x38] sm:$0xff]  }
 0xf83   :  { %v3131_v39 = vpop.f32.mrb[71].mxu0  ;;  %3205 = vrot.lane.b32.xlu1 %v3204_v27, %s3369_s10 }
 0xfba   :  { %v3196_v32 = vpop.permute.xlu1 %3195 }
 0xfbb   :  { %v3198_v38 = vunpack.i.h.bf16 %v3196_v32  ;;  %v3197_v24 = vunpack.i.l.bf16 %v3196_v32  ;;  %v2512_v32 = vrot.slane %v3753_v2, %v1200_v57  ;;  %v2519_v57 = vrot.slane %v3753_v2, %v1207_v29 }
 0xfbd   :  { %v2409_v42 = vsel %vm199_vm2, %v2090_v51, %v3198_v38  ;;  %v2408_v43 = vsel %vm199_vm2, %v2042_v48, %v3197_v24  ;;  %v2418_v51 = vrot.slane %v3753_v2, %v3668_v20 }
 0xfed   :  { %v3201_v40 = vpop.permute.xlu0 %3200 }
 0xfee   :  { %v3203_v35 = vunpack.i.h.bf16 %v3201_v40  ;;  %v3202_v28 = vunpack.i.l.bf16 %v3201_v40 }
 0xff0   :  { %v2411_v45 = vsel %vm1096_vm4, %v2409_v42, %v3203_v35  ;;  %v2410_v46 = vsel %vm1096_vm4, %v2408_v43, %v3202_v28  ;;  %v3227_v28 = vld [vmem:[%s4023_s3 + $0x30] sm:$0xff]  }
 0xff5   :  { %v3206_v41 = vpop.permute.xlu1 %3205 }
 0xff6   :  { %v3208_v7 = vunpack.i.h.bf16 %v3206_v41  ;;  %v3207_v8 = vunpack.i.l.bf16 %v3206_v41 }
 0xff8   :  { %v2413_v47 = vsel %vm1099_vm5, %v2411_v45, %v3208_v7  ;;  %v2412_v49 = vsel %vm1099_vm5, %v2410_v46, %v3207_v8 }
 0xff9   :  { %v2414_v50 = vpack.c.bf16 %v2413_v47, %v2412_v49 }
 0xffb   :  { %3143 = vmatmul.mubr.msk.bf16.vlgmr.msra.gmra.mrb[72].mxu0 %vm107_vm1, %v2414_v50 }
 0xffc   :  { %3162 = vmatprep.mubr.msk.bf16.mxu0 %vm3362_vm0, %v3361_v0  ;;  %3155 = vmatpush3.bf16.msra.mxu0 %v3225_v6  ;;  %v2682_v6 = vrot.slane %v3753_v2, %v1371_v52 }
 0xffd   :  { %3156 = vmatprep.subr.bf16.mxu0 %v3361_v0 }
0x1000   :  { %3157 = vmatpush3.bf16.msra.mxu0 %v3226_v16 }
0x1001   :  { %3158 = vmatprep.subr.bf16.mxu0 %v3361_v0 }
0x1004   :  { %3159 = vmatpush3.bf16.msra.mxu0 %v3227_v28 }
0x1005   :  { %3160 = vmatprep.subr.bf16.mxu0 %v3361_v0 }
0x1008   :  { %3161 = vmatpush3.bf16.msra.mxu0 %v3228_v55 }
0x10ce   :  { %v2468_v48 = vpop.f32.mrb[72].mxu0 }
0x10cf   :  { %v2469_v56 = vadd.f32 %v2468_v48, %v2418_v51  ;;  %v3144_v58 = vpop.f32.mrb[73].mxu0 }
0x10d0   :  { %v2471_v36 = vpop.f32.mrb[74].mxu0 }
0x10d1   :  { %v2472_v23 = vadd.f32 %v2471_v36, %v2418_v51  ;;  %v3145_v44 = vpop.f32.mrb[75].mxu0  ;;  %v2475_v31 = vadd.f32 %v2469_v56, %v3744_v63 }
0x10d3   :  { %v2477_v53 = vsel %vm107_vm1, %v2475_v31, 0.0  ;;  %v2476_v59 = vadd.f32 %v2472_v23, %v3746_v1  ;;  %v3223_v1 = vld [vmem:[%s4022_s2 + $0x50] sm:$0xff]  }
0x10d4   :  { %2478 = vadd.xlane.f32.xlu0 %v2477_v53  ;;  %3147 = vmatpush3.bf16.msra.mxu1 %v3223_v1 }
0x10d5   :  { %v2480_v60 = vsel %vm107_vm1, %v2476_v59, 0.0  ;;  %3148 = vmatprep.subr.bf16.mxu1 %v3361_v0  ;;  %v2582_v0 = vrot.slane %v3753_v2, %v1270_v18 }
0x10d6   :  { %2481 = vadd.xlane.f32.xlu1 %v2480_v60 }
0x10d8   :  { %3149 = vmatpush3.bf16.msra.mxu1 %v3224_v9 }
0x1161   :  { %v2479_v61 = vpop.xlane.xlu0 %2478 }
0x1162   :  { %v2483_v62 = vmul.f32 0.03125, %v2479_v61 }
0x1163   :  { %v2482_v33 = vpop.xlane.xlu1 %2481 }
0x1164   :  { %v2485_v3 = vsub.f32 %v2475_v31, %v2483_v62  ;;  %v2484_v25 = vmul.f32 0.03125, %v2482_v33 }
0x1166   :  { %v2486_v13 = vsub.f32 %v2476_v59, %v2484_v25  ;;  %v2487_v4 = vmul.f32 %v2485_v3, %v2485_v3 }
0x1168   :  { %v2489_v5 = vsel %vm107_vm1, %v2487_v4, 0.0  ;;  %v2488_v22 = vmul.f32 %v2486_v13, %v2486_v13 }
0x1169   :  { %2490 = vadd.xlane.f32.xlu0 %v2489_v5 }
0x116a   :  { %v2492_v63 = vsel %vm107_vm1, %v2488_v22, 0.0 }
0x116d   :  { %2493 = vadd.xlane.f32.xlu0 %v2492_v63 }
0x11f6   :  { %v2491_v19 = vpop.xlane.xlu0 %2490 }
0x11f7   :  { %v2495_v21 = vmul.f32 0.03125, %v2491_v19  ;;  %v2692_v19 = vld [vmem:[#allocation4 + $0x10] sm:$0xff] }
0x11f8   :  { %v2708_v11 = vrot.slane %v2692_v19, %v3668_v20 }
0x11f9   :  { %v2497_v15 = vadd.f32 1e-05, %v2495_v21 }
0x11fa   :  { %v2494_v17 = vpop.xlane.xlu0 %2493 }
0x11fb   :  { %3301 = vrsqrt.f32 %v2497_v15  ;;  %v2496_v26 = vmul.f32 0.03125, %v2494_v17  ;;  %v2688_v15 = vrot.slane %v3753_v2, %v1377_v54 }
0x11fd   :  { %v2498_v30 = vadd.f32 1e-05, %v2496_v26 }
0x11ff   :  { %3303 = vrsqrt.f32 %v2498_v30  ;;  %v2696_v30 = vrot.slane %v2692_v19, %v3458_v12 }
0x1205   :  { %v3302_v14 = vpop.eup %3301 }
0x1206   :  { %v2501_v27 = vmul.f32 %v3302_v14, %v2485_v3 }
0x1208   :  { %v2507_v37 = vmul.f32 %v2506_v10, %v2501_v27 }
0x1209   :  { %v3304_v34 = vpop.eup %3303 }
0x120a   :  { %v2502_v39 = vmul.f32 %v3304_v34, %v2486_v13  ;;  %v2513_v38 = vadd.f32 %v2512_v32, %v2507_v37 }
0x120c   :  { %v2508_v40 = vmul.f32 %v2506_v10, %v2502_v39 }
0x120e   :  { %v2514_v24 = vadd.f32 %v2512_v32, %v2508_v40 }
0x1210   :  { %v2515_v35 = vpack.c.bf16 %v2514_v24, %v2513_v38 }
0x1212   :  { %3151 = vmatmul.mubr.msk.bf16.vlgmr.msra.gmra.mrb[76].mxu1 %vm107_vm1, %v2515_v35 }
0x12e5   :  { %v2569_v41 = vpop.f32.mrb[76].mxu1 }
0x12e6   :  { %v2570_v42 = vadd.f32 %v2569_v41, %v2519_v57  ;;  %v3152_v43 = vpop.f32.mrb[77].mxu1 }
0x12e7   :  { %v2572_v7 = vpop.f32.mrb[78].mxu1 }
0x12e8   :  { %v2573_v8 = vadd.f32 %v2572_v7, %v2519_v57  ;;  %v3153_v45 = vpop.f32.mrb[79].mxu1  ;;  %v2576_v46 = vmax.f32 %v2570_v42, 0.0 }
0x12ea   :  { %v2577_v47 = vmax.f32 %v2573_v8, 0.0 }
0x12ec   :  { %v2578_v49 = vpack.c.bf16 %v2577_v47, %v2576_v46 }
0x12ee   :  { %3163 = vmatmul.mubr.msk.bf16.vlgmr.msra.gmra.mrb[76].mxu0 %vm1296_vm6, %v2578_v49 }
0x13c1   :  { %v2644_v50 = vpop.f32.mrb[76].mxu0 }
0x13c2   :  { %v2645_v51 = vadd.f32 %v2644_v50, %v2582_v0  ;;  %v3164_v48 = vpop.f32.mrb[77].mxu0 }
0x13c3   :  { %v2647_v56 = vpop.f32.mrb[78].mxu0 }
0x13c4   :  { %v2648_v29 = vadd.f32 %v2647_v56, %v2582_v0  ;;  %v3165_v58 = vpop.f32.mrb[79].mxu0  ;;  %v2651_v36 = vadd.f32 %v2645_v51, %v2513_v38 }
0x13c6   :  { %v2653_v23 = vsel %vm107_vm1, %v2651_v36, 0.0  ;;  %v2652_v44 = vadd.f32 %v2648_v29, %v2514_v24 }
0x13c7   :  { %2654 = vadd.xlane.f32.xlu1 %v2653_v23 }
0x13c8   :  { %v2656_v31 = vsel %vm107_vm1, %v2652_v44, 0.0 }
0x13c9   :  { %2657 = vadd.xlane.f32.xlu0 %v2656_v31 }
0x1454   :  { %v2655_v53 = vpop.xlane.xlu1 %2654 }
0x1455   :  { %v2659_v59 = vmul.f32 0.03125, %v2655_v53 }
0x1456   :  { %v2658_v60 = vpop.xlane.xlu0 %2657 }
0x1457   :  { %v2661_v61 = vsub.f32 %v2651_v36, %v2659_v59  ;;  %v2660_v62 = vmul.f32 0.03125, %v2658_v60 }
0x1459   :  { %v2662_v18 = vsub.f32 %v2652_v44, %v2660_v62  ;;  %v2663_v33 = vmul.f32 %v2661_v61, %v2661_v61 }
0x145b   :  { %v2665_v3 = vsel %vm107_vm1, %v2663_v33, 0.0  ;;  %v2664_v25 = vmul.f32 %v2662_v18, %v2662_v18 }
0x145c   :  { %2666 = vadd.xlane.f32.xlu1 %v2665_v3 }
0x145d   :  { %v2668_v13 = vsel %vm107_vm1, %v2664_v25, 0.0 }
0x145e   :  { %2669 = vadd.xlane.f32.xlu0 %v2668_v13 }
0x14e9   :  { %v2667_v4 = vpop.xlane.xlu1 %2666 }
0x14ea   :  { %v2671_v5 = vmul.f32 0.03125, %v2667_v4 }
0x14eb   :  { %v2670_v22 = vpop.xlane.xlu0 %2669 }
0x14ec   :  { %v2673_v63 = vadd.f32 1e-05, %v2671_v5  ;;  %v2672_v1 = vmul.f32 0.03125, %v2670_v22 }
0x14ee   :  { %3305 = vrsqrt.f32 %v2673_v63  ;;  %v2674_v9 = vadd.f32 1e-05, %v2672_v1 }
0x14f0   :  { %3307 = vrsqrt.f32 %v2674_v9 }
0x14f8   :  { %v3306_v16 = vpop.eup %3305 }
0x14f9   :  { %v2677_v21 = vmul.f32 %v3306_v16, %v2661_v61 }
0x14fa   :  { %v3308_v17 = vpop.eup %3307 }
0x14fb   :  { %v2683_v26 = vmul.f32 %v2682_v6, %v2677_v21  ;;  %v2678_v14 = vmul.f32 %v3308_v17, %v2662_v18 }
0x14fd   :  { %v2689_v10 = vadd.f32 %v2688_v15, %v2683_v26  ;;  %v2684_v27 = vmul.f32 %v2682_v6, %v2678_v14 }
0x14ff   :  { %v2697_v34 = vmul.f32 %v2696_v30, %v2689_v10  ;;  %v2690_v37 = vadd.f32 %v2688_v15, %v2684_v27 }
0x1501   :  { %v2699_v39 = vsel %vm107_vm1, %v2697_v34, 0.0  ;;  %v2698_v32 = vmul.f32 %v2696_v30, %v2690_v37 }
0x1502   :  { %2700 = vadd.xlane.f32.xlu1 %v2699_v39 }
0x1503   :  { %v2702_v52 = vsel %vm107_vm1, %v2698_v32, 0.0 }
0x1504   :  { %2703 = vadd.xlane.f32.xlu0 %v2702_v52 }
0x158f   :  { %v2701_v54 = vpop.xlane.xlu1 %2700 }
0x1590   :  { %v2709_v2 = vadd.f32 %v2708_v11, %v2701_v54 }
0x1591   :  { %v2704_v40 = vpop.xlane.xlu0 %2703 }
0x1592   :  { %2712 = vst.msk [vmem:[%s4025_s5] sm:$0xff] %vm2711_vm7, %v2709_v2  ;;  %v2710_v12 = vadd.f32 %v2708_v11, %v2704_v40 }
0x1594   :  { %2713 = vst.msk [vmem:[%s4025_s5 + $0x8] sm:$0xff] %vm2711_vm7, %v2710_v12 }
0x1595   :  { %2718 = vsyncpa [#allocation3], 1 }
0x1596   :  { %2719 = vsyncpa [#allocation5], 1 }

</bundles_post_ra>
